<compile_context>
chip_gen: v7x
topology: tpu7x:2x2x1
jax: 0.10.0
libtpu: 0.0.40
codegen_flags: <defaults>
</compile_context>

<pallas_src>
import numpy as np

import jax
import jax.numpy as jnp
from jax import lax
from jax.experimental import pallas as pl
from jax.experimental.pallas import tpu as pltpu


# ----------------------------------------------------------------------------
# Static index tables for the (wrapper-side) conv1 im2col.
#
# A1 row order (per sample):  r = e*64 + q*16 + i*4 + j  where
#   e = e1*2+e2  : pool1 2x2 window member     -> pool1 = max of 4 row blocks
#   q = pr*2+pc  : parity class of the pool1 output position (u,v)=(2i+pr,2j+pc)
#                  -> p1 row q*16+i*4+j is parity-plane q, grid cell (i,j)
# conv1 output position for row r:  (h,w) = (4i+2pr+e1, 4j+2pc+e2)
# A1[r, ki*3+kj] = xpad[h+ki, w+kj]   (xpad = zero-padded 18x18 input)
# ----------------------------------------------------------------------------
def _conv1_im2col_indices():
    r = np.arange(256)
    e = r // 64
    q = (r // 16) % 4
    i = (r // 4) % 4
    j = r % 4
    e1, e2 = e // 2, e % 2
    pr, pc = q // 2, q % 2
    h = 4 * i + 2 * pr + e1
    w = 4 * j + 2 * pc + e2
    k = np.arange(9)
    ki, kj = k // 3, k % 3
    rows = h[:, None] + ki[None, :]
    cols = w[:, None] + kj[None, :]
    return rows, cols


_A1_ROWS, _A1_COLS = _conv1_im2col_indices()


# ----------------------------------------------------------------------------
# Constant 16x16 shift matrices for conv2's zero-padded spatial shifts.
# S[(sa+1)*3+(sb+1)][s*4+t, i*4+j] = 1  iff  (i,j) == (s+sa, t+sb) in [0,4)^2,
# so (S @ P)[s*4+t, :] = P[(s+sa)*4+(t+sb), :]  (zero where out of range).
# ----------------------------------------------------------------------------
def _shift_matrices():
    S = np.zeros((3, 3, 16, 16), np.float32)
    for sa in (-1, 0, 1):
        for sb in (-1, 0, 1):
            for s in range(4):
                for t in range(4):
                    i, j = s + sa, t + sb
                    if 0 <= i < 4 and 0 <= j < 4:
                        S[sa + 1, sb + 1, s * 4 + t, i * 4 + j] = 1.0
    return S.reshape(9, 16, 16)


_SHIFT_MATS = _shift_matrices()


# ----------------------------------------------------------------------------
# The fused Pallas kernel (one grid step == one sample)
# ----------------------------------------------------------------------------
def _convnet_kernel(a1_ref, w1_ref, b1_ref, w2_ref, b2_ref, s_ref,
                    w3_ref, b3_ref, w4_ref, b4_ref, o_ref):
    f32 = jnp.float32
    bf16 = jnp.bfloat16

    # ---- conv1: 3x3, 1->16 (single bf16 MXU GEMM, K=9) ----------------------
    y1 = jnp.dot(a1_ref[0], w1_ref[...], preferred_element_type=f32)  # (256,16)

    # ---- maxpool1: 4 window members == 4 contiguous 64-row blocks.
    #      bias+relu applied after the max (x -> relu(x+b) is monotone). -----
    p1 = jnp.maximum(jnp.maximum(y1[0:64], y1[64:128]),
                     jnp.maximum(y1[128:192], y1[192:256]))           # (64,16)
    p1 = jnp.maximum(p1 + b1_ref[...], 0.0)
    p1b = p1.astype(bf16)
    # p1 row = q*16 + i*4 + j  ==  parity plane q=(pr,pc), grid cell (i,j)

    # ---- conv2 (3x3, 16->32, pad 1) + maxpool2, accumulated over the 9 taps.
    #      For pool2-window member f=(f1,f2) the conv2 output position is
    #      (2s+f1, 2t+f2); kernel tap (ki,kj) reads pool1 at
    #      (2s+oy, 2t+ox) with oy=f1+ki-1, ox=f2+kj-1, i.e. parity plane
    #      pidx=(oy%2)*2+(ox%2) shifted by (sa,sb)=(oy//2, ox//2).
    #      The shift is a constant 0/1 matmul (MXU), so no scratch / im2col. --
    p2 = None
    for f1 in range(2):
        for f2 in range(2):
            acc = jnp.zeros((16, 32), f32)
            for ki in range(3):
                for kj in range(3):
                    oy = f1 + ki - 1
                    ox = f2 + kj - 1
                    pidx = (oy % 2) * 2 + (ox % 2)
                    sa, sb = oy // 2, ox // 2
                    plane = p1b[pidx * 16:(pidx + 1) * 16, :]          # (16,16)
                    inner = jnp.dot(plane, w2_ref[ki * 3 + kj],
                                    preferred_element_type=f32)        # (16,32)
                    acc = acc + jnp.dot(s_ref[(sa + 1) * 3 + (sb + 1)],
                                        inner, preferred_element_type=f32)
            p2 = acc if p2 is None else jnp.maximum(p2, acc)
    # bias + relu after the pool2 max (same monotonicity argument)
    p2 = jnp.maximum(p2 + b2_ref[...], 0.0)                            # (16,32)

    # ---- deconv1: 2x2 s2, 32->16, relu.  Depth-to-space folded into the
    #      column order of w3: col = (d1*2+d2)*16 + c3. ----------------------
    z3 = jnp.dot(p2.astype(bf16), w3_ref[...], preferred_element_type=f32)
    z3 = jnp.maximum(z3 + b3_ref[...], 0.0)                            # (16,64)

    # ---- deconv2: 2x2 s2, 16->1, sigmoid.  w4 is block-diagonal so deconv1's
    #      depth-to-space needs no data movement. ----------------------------
    z4 = jnp.dot(z3.astype(bf16), w4_ref[...], preferred_element_type=f32)
    z4 = z4 + b4_ref[...]                                              # (16,16)
    out = 1.0 / (1.0 + jnp.exp(-z4))                                   # exact sigmoid
    o_ref[0] = out.astype(o_ref.dtype)


# ----------------------------------------------------------------------------
# Wrapper: weight repacking, input im2col, kernel call, output un-scramble
# ----------------------------------------------------------------------------
def convnet_forward(x_nchw, p):
    n = x_nchw.shape[0]
    assert x_nchw.shape[1:] == (1, 16, 16), x_nchw.shape

    # Input im2col (1 channel) -- the only wrapper-side im2col; cast to bf16
    # so the kernel does no cast and the per-sample DMA is half the bytes.
    xpad = jnp.pad(x_nchw[:, 0, :, :], ((0, 0), (1, 1), (1, 1)))   # (N,18,18)
    a1 = xpad[:, _A1_ROWS, _A1_COLS].astype(jnp.bfloat16)          # (N,256,9)

    # Weight repacking (tiny, once per call; bf16 operands for the MXU).
    w1m = jnp.transpose(p["w1"][:, 0], (1, 2, 0)).reshape(9, 16).astype(jnp.bfloat16)
    b1m = p["b1"].reshape(1, 16).astype(jnp.float32)
    # w2 as (9, 16, 32): one contiguous (Cin x Cout) slab per kernel tap.
    w2t = jnp.transpose(p["w2"], (2, 3, 1, 0)).reshape(9, 16, 32).astype(jnp.bfloat16)
    b2m = p["b2"].reshape(1, 32).astype(jnp.float32)
    smat = jnp.asarray(_SHIFT_MATS, dtype=jnp.float32)             # (9,16,16)
    w3m = jnp.transpose(p["w3"], (0, 2, 3, 1)).reshape(32, 64).astype(jnp.bfloat16)
    b3m = jnp.tile(p["b3"], 4).reshape(1, 64).astype(jnp.float32)
    w4m = p["w4"][:, 0].reshape(16, 4).astype(jnp.float32)
    w4blk = jnp.kron(jnp.eye(4, dtype=jnp.float32), w4m).astype(jnp.bfloat16)  # (64,16)
    b4m = jnp.tile(p["b4"], 16).reshape(1, 16).astype(jnp.float32)

    def full(shape):
        return pl.BlockSpec(shape, lambda i, _s=shape: (0,) * len(_s))

    out16 = pl.pallas_call(
        _convnet_kernel,
        out_shape=jax.ShapeDtypeStruct((n, 16, 16), jnp.float32),
        grid=(n,),
        in_specs=[
            pl.BlockSpec((1, 256, 9), lambda i: (i, 0, 0)),   # per-sample A1
            full((9, 16)), full((1, 16)),                      # conv1 w, b
            full((9, 16, 32)), full((1, 32)),                  # conv2 w, b
            full((9, 16, 16)),                                 # shift matrices
            full((32, 64)), full((1, 64)),                     # deconv1 w, b
            full((64, 16)), full((1, 16)),                     # deconv2 w, b
        ],
        out_specs=pl.BlockSpec((1, 16, 16), lambda i: (i, 0, 0)),
        compiler_params=pltpu.CompilerParams(
            dimension_semantics=("parallel",)),
    )(a1, w1m, b1m, w2t, b2m, smat, w3m, b3m, w4blk, b4m)

    # out16[n, s*4+t, (d1*2+d2)*4 + g1*2+g2] == image[n, 4s+2d1+g1, 4t+2d2+g2]
    o = out16.reshape(n, 4, 4, 2, 2, 2, 2)
    o = jnp.transpose(o, (0, 1, 3, 5, 2, 4, 6)).reshape(n, 1, 16, 16)
    return o


# ----------------------------------------------------------------------------
# Deterministic parameter init (shapes from ConvNet.__init__)
# ----------------------------------------------------------------------------
def init_params(key):
    ks = jax.random.split(key, 8)

    def init(k, shape, fan_in):
        return jax.random.normal(k, shape, jnp.float32) / jnp.sqrt(fan_in)

    return {
        "w1": init(ks[0], (16, 1, 3, 3), 1 * 9),   "b1": init(ks[1], (16,), 9.0),
        "w2": init(ks[2], (32, 16, 3, 3), 16 * 9), "b2": init(ks[3], (32,), 144.0),
        "w3": init(ks[4], (32, 16, 2, 2), 32 * 4), "b3": init(ks[5], (16,), 128.0),
        "w4": init(ks[6], (16, 1, 2, 2), 16 * 4),  "b4": init(ks[7], (1,), 64.0),
    }


# ----------------------------------------------------------------------------
# Pure-JAX reference (lax conv / reduce_window / einsum) for validation
# ----------------------------------------------------------------------------
def ref_forward(x, p):
    dn = ("NCHW", "OIHW", "NCHW")
    hi = lax.Precision.HIGHEST

    def convt(x_nchw, w, b):
        xh = jnp.transpose(x_nchw, (0, 2, 3, 1))
        t = jnp.einsum("nhwi,iojk->nhjwko", xh, w, precision=hi)
        n, H, _, W, _, co = t.shape
        t = t.reshape(n, 2 * H, 2 * W, co) + b
        return jnp.transpose(t, (0, 3, 1, 2))

    h = lax.conv_general_dilated(x, p["w1"], (1, 1), [(1, 1), (1, 1)],
                                 dimension_numbers=dn, precision=hi)
    h = jax.nn.relu(h + p["b1"][None, :, None, None])
    h = lax.reduce_window(h, -jnp.inf, lax.max, (1, 1, 2, 2), (1, 1, 2, 2), "VALID")
    h = lax.conv_general_dilated(h, p["w2"], (1, 1), [(1, 1), (1, 1)],
                                 dimension_numbers=dn, precision=hi)
    h = jax.nn.relu(h + p["b2"][None, :, None, None])
    h = lax.reduce_window(h, -jnp.inf, lax.max, (1, 1, 2, 2), (1, 1, 2, 2), "VALID")
    h = jax.nn.relu(convt(h, p["w3"], p["b3"]))
    h = jax.nn.sigmoid(convt(h, p["w4"], p["b4"]))
    return h


# ----------------------------------------------------------------------------
if __name__ == "__main__":
    key = jax.random.PRNGKey(0)
    kx, kp = jax.random.split(key)
    x = jax.random.normal(kx, (2, 1, 16, 16), jnp.float32)   # NCHW, 1 channel
    params = init_params(kp)

    out = jax.jit(convnet_forward)(x, params)
    out = jax.block_until_ready(out)
    assert out.shape == (2, 1, 16, 16), out.shape

    ref = ref_forward(x, params)
    err = float(jnp.max(jnp.abs(out - ref)))
    # bf16 MXU operands (f32 accumulation) => slightly looser than pure-f32.
    assert err < 2e-2, f"max abs error {err}"

    print("KERNEL_OK")
</pallas_src>

<mosaic_0001>
module attributes {stable_mosaic.version = 11 : i64} {
  func.func @_convnet_kernel(%arg0: i32, %arg1: memref<1x256x9xbf16, #tpu.memory_space<vmem>>, %arg2: memref<9x16xbf16, #tpu.memory_space<vmem>>, %arg3: memref<1x16xf32, #tpu.memory_space<vmem>>, %arg4: memref<9x16x32xbf16, #tpu.memory_space<vmem>>, %arg5: memref<1x32xf32, #tpu.memory_space<vmem>>, %arg6: memref<9x16x16xf32, #tpu.memory_space<vmem>>, %arg7: memref<32x64xbf16, #tpu.memory_space<vmem>>, %arg8: memref<1x64xf32, #tpu.memory_space<vmem>>, %arg9: memref<64x16xbf16, #tpu.memory_space<vmem>>, %arg10: memref<1x16xf32, #tpu.memory_space<vmem>>, %arg11: memref<1x16x16xf32, #tpu.memory_space<vmem>>) attributes {dimension_semantics = [#tpu.dimension_semantics<parallel>], iteration_bounds = array<i64: 2>, scalar_prefetch = 0 : i64, scratch_operands = 0 : i64, tpu.core_type = #tpu.core_type<tc>, window_params = [{transform_indices = @transform_0, window_bounds = array<i64: 1, 256, 9>}, {pipeline_mode = #tpu.pipeline_mode<synchronous>, transform_indices = @transform_1, window_bounds = array<i64: 9, 16>}, {pipeline_mode = #tpu.pipeline_mode<synchronous>, transform_indices = @transform_2, window_bounds = array<i64: 1, 16>}, {pipeline_mode = #tpu.pipeline_mode<synchronous>, transform_indices = @transform_3, window_bounds = array<i64: 9, 16, 32>}, {pipeline_mode = #tpu.pipeline_mode<synchronous>, transform_indices = @transform_4, window_bounds = array<i64: 1, 32>}, {pipeline_mode = #tpu.pipeline_mode<synchronous>, transform_indices = @transform_5, window_bounds = array<i64: 9, 16, 16>}, {pipeline_mode = #tpu.pipeline_mode<synchronous>, transform_indices = @transform_6, window_bounds = array<i64: 32, 64>}, {pipeline_mode = #tpu.pipeline_mode<synchronous>, transform_indices = @transform_7, window_bounds = array<i64: 1, 64>}, {pipeline_mode = #tpu.pipeline_mode<synchronous>, transform_indices = @transform_8, window_bounds = array<i64: 64, 16>}, {pipeline_mode = #tpu.pipeline_mode<synchronous>, transform_indices = @transform_9, window_bounds = array<i64: 1, 16>}, {transform_indices = @transform_10, window_bounds = array<i64: 1, 16, 16>}]} {
    %c0 = arith.constant 0 : index
    %c0_0 = arith.constant 0 : index
    %c0_1 = arith.constant 0 : index
    %0 = vector.load %arg1[%c0, %c0_0, %c0_1] : memref<1x256x9xbf16, #tpu.memory_space<vmem>>, vector<1x256x9xbf16>
    %1 = vector.shape_cast %0 : vector<1x256x9xbf16> to vector<256x9xbf16>
    %c0_2 = arith.constant 0 : index
    %c0_3 = arith.constant 0 : index
    %2 = vector.load %arg2[%c0_2, %c0_3] : memref<9x16xbf16, #tpu.memory_space<vmem>>, vector<9x16xbf16>
    %cst = arith.constant dense<0.000000e+00> : vector<256x16xf32>
    %3 = tpu.matmul %1, %2, %cst {dimension_numbers = #tpu.dot_dimension_numbers<[1], [0], [0], [1], [0, 0, 1, 1], [], []>} : vector<256x9xbf16>, vector<9x16xbf16>, vector<256x16xf32> -> vector<256x16xf32>
    %4 = vector.extract_strided_slice %3 {offsets = [0, 0], sizes = [64, 16], strides = [1, 1]} : vector<256x16xf32> to vector<64x16xf32>
    %5 = vector.extract_strided_slice %3 {offsets = [64, 0], sizes = [64, 16], strides = [1, 1]} : vector<256x16xf32> to vector<64x16xf32>
    %6 = arith.maximumf %4, %5 : vector<64x16xf32>
    %7 = vector.extract_strided_slice %3 {offsets = [128, 0], sizes = [64, 16], strides = [1, 1]} : vector<256x16xf32> to vector<64x16xf32>
    %8 = vector.extract_strided_slice %3 {offsets = [192, 0], sizes = [64, 16], strides = [1, 1]} : vector<256x16xf32> to vector<64x16xf32>
    %9 = arith.maximumf %7, %8 : vector<64x16xf32>
    %10 = arith.maximumf %6, %9 : vector<64x16xf32>
    %c0_4 = arith.constant 0 : index
    %c0_5 = arith.constant 0 : index
    %11 = vector.load %arg3[%c0_4, %c0_5] : memref<1x16xf32, #tpu.memory_space<vmem>>, vector<1x16xf32>
    %12 = vector.broadcast %11 : vector<1x16xf32> to vector<64x16xf32>
    %13 = arith.addf %10, %12 : vector<64x16xf32>
    %cst_6 = arith.constant 0.000000e+00 : f32
    %14 = vector.broadcast %cst_6 : f32 to vector<64x16xf32>
    %15 = arith.maximumf %13, %14 : vector<64x16xf32>
    %16 = arith.truncf %15 : vector<64x16xf32> to vector<64x16xbf16>
    %cst_7 = arith.constant 0.000000e+00 : f32
    %17 = vector.broadcast %cst_7 : f32 to vector<16x32xf32>
    %18 = vector.extract_strided_slice %16 {offsets = [48, 0], sizes = [16, 16], strides = [1, 1]} : vector<64x16xbf16> to vector<16x16xbf16>
    %c0_8 = arith.constant 0 : index
    %c0_9 = arith.constant 0 : index
    %c0_10 = arith.constant 0 : index
    %19 = vector.load %arg4[%c0_8, %c0_9, %c0_10] : memref<9x16x32xbf16, #tpu.memory_space<vmem>>, vector<1x16x32xbf16>
    %20 = vector.shape_cast %19 : vector<1x16x32xbf16> to vector<16x32xbf16>
    %cst_11 = arith.constant dense<0.000000e+00> : vector<16x32xf32>
    %21 = tpu.matmul %18, %20, %cst_11 {dimension_numbers = #tpu.dot_dimension_numbers<[1], [0], [0], [1], [0, 0, 1, 1], [], []>} : vector<16x16xbf16>, vector<16x32xbf16>, vector<16x32xf32> -> vector<16x32xf32>
    %c0_12 = arith.constant 0 : index
    %c0_13 = arith.constant 0 : index
    %c0_14 = arith.constant 0 : index
    %22 = vector.load %arg6[%c0_12, %c0_13, %c0_14] : memref<9x16x16xf32, #tpu.memory_space<vmem>>, vector<1x16x16xf32>
    %23 = vector.shape_cast %22 : vector<1x16x16xf32> to vector<16x16xf32>
    %cst_15 = arith.constant dense<0.000000e+00> : vector<16x32xf32>
    %24 = tpu.matmul %23, %21, %cst_15 {dimension_numbers = #tpu.dot_dimension_numbers<[1], [0], [0], [1], [0, 0, 1, 1], [], []>} : vector<16x16xf32>, vector<16x32xf32>, vector<16x32xf32> -> vector<16x32xf32>
    %25 = arith.addf %17, %24 : vector<16x32xf32>
    %26 = vector.extract_strided_slice %16 {offsets = [32, 0], sizes = [16, 16], strides = [1, 1]} : vector<64x16xbf16> to vector<16x16xbf16>
    %c1 = arith.constant 1 : index
    %c0_16 = arith.constant 0 : index
    %c0_17 = arith.constant 0 : index
    %27 = vector.load %arg4[%c1, %c0_16, %c0_17] : memref<9x16x32xbf16, #tpu.memory_space<vmem>>, vector<1x16x32xbf16>
    %28 = vector.shape_cast %27 : vector<1x16x32xbf16> to vector<16x32xbf16>
    %cst_18 = arith.constant dense<0.000000e+00> : vector<16x32xf32>
    %29 = tpu.matmul %26, %28, %cst_18 {dimension_numbers = #tpu.dot_dimension_numbers<[1], [0], [0], [1], [0, 0, 1, 1], [], []>} : vector<16x16xbf16>, vector<16x32xbf16>, vector<16x32xf32> -> vector<16x32xf32>
    %c1_19 = arith.constant 1 : index
    %c0_20 = arith.constant 0 : index
    %c0_21 = arith.constant 0 : index
    %30 = vector.load %arg6[%c1_19, %c0_20, %c0_21] : memref<9x16x16xf32, #tpu.memory_space<vmem>>, vector<1x16x16xf32>
    %31 = vector.shape_cast %30 : vector<1x16x16xf32> to vector<16x16xf32>
    %cst_22 = arith.constant dense<0.000000e+00> : vector<16x32xf32>
    %32 = tpu.matmul %31, %29, %cst_22 {dimension_numbers = #tpu.dot_dimension_numbers<[1], [0], [0], [1], [0, 0, 1, 1], [], []>} : vector<16x16xf32>, vector<16x32xf32>, vector<16x32xf32> -> vector<16x32xf32>
    %33 = arith.addf %25, %32 : vector<16x32xf32>
    %34 = vector.extract_strided_slice %16 {offsets = [48, 0], sizes = [16, 16], strides = [1, 1]} : vector<64x16xbf16> to vector<16x16xbf16>
    %c2 = arith.constant 2 : index
    %c0_23 = arith.constant 0 : index
    %c0_24 = arith.constant 0 : index
    %35 = vector.load %arg4[%c2, %c0_23, %c0_24] : memref<9x16x32xbf16, #tpu.memory_space<vmem>>, vector<1x16x32xbf16>
    %36 = vector.shape_cast %35 : vector<1x16x32xbf16> to vector<16x32xbf16>
    %cst_25 = arith.constant dense<0.000000e+00> : vector<16x32xf32>
    %37 = tpu.matmul %34, %36, %cst_25 {dimension_numbers = #tpu.dot_dimension_numbers<[1], [0], [0], [1], [0, 0, 1, 1], [], []>} : vector<16x16xbf16>, vector<16x32xbf16>, vector<16x32xf32> -> vector<16x32xf32>
    %c1_26 = arith.constant 1 : index
    %c0_27 = arith.constant 0 : index
    %c0_28 = arith.constant 0 : index
    %38 = vector.load %arg6[%c1_26, %c0_27, %c0_28] : memref<9x16x16xf32, #tpu.memory_space<vmem>>, vector<1x16x16xf32>
    %39 = vector.shape_cast %38 : vector<1x16x16xf32> to vector<16x16xf32>
    %cst_29 = arith.constant dense<0.000000e+00> : vector<16x32xf32>
    %40 = tpu.matmul %39, %37, %cst_29 {dimension_numbers = #tpu.dot_dimension_numbers<[1], [0], [0], [1], [0, 0, 1, 1], [], []>} : vector<16x16xf32>, vector<16x32xf32>, vector<16x32xf32> -> vector<16x32xf32>
    %41 = arith.addf %33, %40 : vector<16x32xf32>
    %42 = vector.extract_strided_slice %16 {offsets = [16, 0], sizes = [16, 16], strides = [1, 1]} : vector<64x16xbf16> to vector<16x16xbf16>
    %c3 = arith.constant 3 : index
    %c0_30 = arith.constant 0 : index
    %c0_31 = arith.constant 0 : index
    %43 = vector.load %arg4[%c3, %c0_30, %c0_31] : memref<9x16x32xbf16, #tpu.memory_space<vmem>>, vector<1x16x32xbf16>
    %44 = vector.shape_cast %43 : vector<1x16x32xbf16> to vector<16x32xbf16>
    %cst_32 = arith.constant dense<0.000000e+00> : vector<16x32xf32>
    %45 = tpu.matmul %42, %44, %cst_32 {dimension_numbers = #tpu.dot_dimension_numbers<[1], [0], [0], [1], [0, 0, 1, 1], [], []>} : vector<16x16xbf16>, vector<16x32xbf16>, vector<16x32xf32> -> vector<16x32xf32>
    %c3_33 = arith.constant 3 : index
    %c0_34 = arith.constant 0 : index
    %c0_35 = arith.constant 0 : index
    %46 = vector.load %arg6[%c3_33, %c0_34, %c0_35] : memref<9x16x16xf32, #tpu.memory_space<vmem>>, vector<1x16x16xf32>
    %47 = vector.shape_cast %46 : vector<1x16x16xf32> to vector<16x16xf32>
    %cst_36 = arith.constant dense<0.000000e+00> : vector<16x32xf32>
    %48 = tpu.matmul %47, %45, %cst_36 {dimension_numbers = #tpu.dot_dimension_numbers<[1], [0], [0], [1], [0, 0, 1, 1], [], []>} : vector<16x16xf32>, vector<16x32xf32>, vector<16x32xf32> -> vector<16x32xf32>
    %49 = arith.addf %41, %48 : vector<16x32xf32>
    %50 = vector.extract_strided_slice %16 {offsets = [0, 0], sizes = [16, 16], strides = [1, 1]} : vector<64x16xbf16> to vector<16x16xbf16>
    %c4 = arith.constant 4 : index
    %c0_37 = arith.constant 0 : index
    %c0_38 = arith.constant 0 : index
    %51 = vector.load %arg4[%c4, %c0_37, %c0_38] : memref<9x16x32xbf16, #tpu.memory_space<vmem>>, vector<1x16x32xbf16>
    %52 = vector.shape_cast %51 : vector<1x16x32xbf16> to vector<16x32xbf16>
    %cst_39 = arith.constant dense<0.000000e+00> : vector<16x32xf32>
    %53 = tpu.matmul %50, %52, %cst_39 {dimension_numbers = #tpu.dot_dimension_numbers<[1], [0], [0], [1], [0, 0, 1, 1], [], []>} : vector<16x16xbf16>, vector<16x32xbf16>, vector<16x32xf32> -> vector<16x32xf32>
    %c4_40 = arith.constant 4 : index
    %c0_41 = arith.constant 0 : index
    %c0_42 = arith.constant 0 : index
    %54 = vector.load %arg6[%c4_40, %c0_41, %c0_42] : memref<9x16x16xf32, #tpu.memory_space<vmem>>, vector<1x16x16xf32>
    %55 = vector.shape_cast %54 : vector<1x16x16xf32> to vector<16x16xf32>
    %cst_43 = arith.constant dense<0.000000e+00> : vector<16x32xf32>
    %56 = tpu.matmul %55, %53, %cst_43 {dimension_numbers = #tpu.dot_dimension_numbers<[1], [0], [0], [1], [0, 0, 1, 1], [], []>} : vector<16x16xf32>, vector<16x32xf32>, vector<16x32xf32> -> vector<16x32xf32>
    %57 = arith.addf %49, %56 : vector<16x32xf32>
    %58 = vector.extract_strided_slice %16 {offsets = [16, 0], sizes = [16, 16], strides = [1, 1]} : vector<64x16xbf16> to vector<16x16xbf16>
    %c5 = arith.constant 5 : index
    %c0_44 = arith.constant 0 : index
    %c0_45 = arith.constant 0 : index
    %59 = vector.load %arg4[%c5, %c0_44, %c0_45] : memref<9x16x32xbf16, #tpu.memory_space<vmem>>, vector<1x16x32xbf16>
    %60 = vector.shape_cast %59 : vector<1x16x32xbf16> to vector<16x32xbf16>
    %cst_46 = arith.constant dense<0.000000e+00> : vector<16x32xf32>
    %61 = tpu.matmul %58, %60, %cst_46 {dimension_numbers = #tpu.dot_dimension_numbers<[1], [0], [0], [1], [0, 0, 1, 1], [], []>} : vector<16x16xbf16>, vector<16x32xbf16>, vector<16x32xf32> -> vector<16x32xf32>
    %c4_47 = arith.constant 4 : index
    %c0_48 = arith.constant 0 : index
    %c0_49 = arith.constant 0 : index
    %62 = vector.load %arg6[%c4_47, %c0_48, %c0_49] : memref<9x16x16xf32, #tpu.memory_space<vmem>>, vector<1x16x16xf32>
    %63 = vector.shape_cast %62 : vector<1x16x16xf32> to vector<16x16xf32>
    %cst_50 = arith.constant dense<0.000000e+00> : vector<16x32xf32>
    %64 = tpu.matmul %63, %61, %cst_50 {dimension_numbers = #tpu.dot_dimension_numbers<[1], [0], [0], [1], [0, 0, 1, 1], [], []>} : vector<16x16xf32>, vector<16x32xf32>, vector<16x32xf32> -> vector<16x32xf32>
    %65 = arith.addf %57, %64 : vector<16x32xf32>
    %66 = vector.extract_strided_slice %16 {offsets = [48, 0], sizes = [16, 16], strides = [1, 1]} : vector<64x16xbf16> to vector<16x16xbf16>
    %c6 = arith.constant 6 : index
    %c0_51 = arith.constant 0 : index
    %c0_52 = arith.constant 0 : index
    %67 = vector.load %arg4[%c6, %c0_51, %c0_52] : memref<9x16x32xbf16, #tpu.memory_space<vmem>>, vector<1x16x32xbf16>
    %68 = vector.shape_cast %67 : vector<1x16x32xbf16> to vector<16x32xbf16>
    %cst_53 = arith.constant dense<0.000000e+00> : vector<16x32xf32>
    %69 = tpu.matmul %66, %68, %cst_53 {dimension_numbers = #tpu.dot_dimension_numbers<[1], [0], [0], [1], [0, 0, 1, 1], [], []>} : vector<16x16xbf16>, vector<16x32xbf16>, vector<16x32xf32> -> vector<16x32xf32>
    %c3_54 = arith.constant 3 : index
    %c0_55 = arith.constant 0 : index
    %c0_56 = arith.constant 0 : index
    %70 = vector.load %arg6[%c3_54, %c0_55, %c0_56] : memref<9x16x16xf32, #tpu.memory_space<vmem>>, vector<1x16x16xf32>
    %71 = vector.shape_cast %70 : vector<1x16x16xf32> to vector<16x16xf32>
    %cst_57 = arith.constant dense<0.000000e+00> : vector<16x32xf32>
    %72 = tpu.matmul %71, %69, %cst_57 {dimension_numbers = #tpu.dot_dimension_numbers<[1], [0], [0], [1], [0, 0, 1, 1], [], []>} : vector<16x16xf32>, vector<16x32xf32>, vector<16x32xf32> -> vector<16x32xf32>
    %73 = arith.addf %65, %72 : vector<16x32xf32>
    %74 = vector.extract_strided_slice %16 {offsets = [32, 0], sizes = [16, 16], strides = [1, 1]} : vector<64x16xbf16> to vector<16x16xbf16>
    %c7 = arith.constant 7 : index
    %c0_58 = arith.constant 0 : index
    %c0_59 = arith.constant 0 : index
    %75 = vector.load %arg4[%c7, %c0_58, %c0_59] : memref<9x16x32xbf16, #tpu.memory_space<vmem>>, vector<1x16x32xbf16>
    %76 = vector.shape_cast %75 : vector<1x16x32xbf16> to vector<16x32xbf16>
    %cst_60 = arith.constant dense<0.000000e+00> : vector<16x32xf32>
    %77 = tpu.matmul %74, %76, %cst_60 {dimension_numbers = #tpu.dot_dimension_numbers<[1], [0], [0], [1], [0, 0, 1, 1], [], []>} : vector<16x16xbf16>, vector<16x32xbf16>, vector<16x32xf32> -> vector<16x32xf32>
    %c4_61 = arith.constant 4 : index
    %c0_62 = arith.constant 0 : index
    %c0_63 = arith.constant 0 : index
    %78 = vector.load %arg6[%c4_61, %c0_62, %c0_63] : memref<9x16x16xf32, #tpu.memory_space<vmem>>, vector<1x16x16xf32>
    %79 = vector.shape_cast %78 : vector<1x16x16xf32> to vector<16x16xf32>
    %cst_64 = arith.constant dense<0.000000e+00> : vector<16x32xf32>
    %80 = tpu.matmul %79, %77, %cst_64 {dimension_numbers = #tpu.dot_dimension_numbers<[1], [0], [0], [1], [0, 0, 1, 1], [], []>} : vector<16x16xf32>, vector<16x32xf32>, vector<16x32xf32> -> vector<16x32xf32>
    %81 = arith.addf %73, %80 : vector<16x32xf32>
    %82 = vector.extract_strided_slice %16 {offsets = [48, 0], sizes = [16, 16], strides = [1, 1]} : vector<64x16xbf16> to vector<16x16xbf16>
    %c8 = arith.constant 8 : index
    %c0_65 = arith.constant 0 : index
    %c0_66 = arith.constant 0 : index
    %83 = vector.load %arg4[%c8, %c0_65, %c0_66] : memref<9x16x32xbf16, #tpu.memory_space<vmem>>, vector<1x16x32xbf16>
    %84 = vector.shape_cast %83 : vector<1x16x32xbf16> to vector<16x32xbf16>
    %cst_67 = arith.constant dense<0.000000e+00> : vector<16x32xf32>
    %85 = tpu.matmul %82, %84, %cst_67 {dimension_numbers = #tpu.dot_dimension_numbers<[1], [0], [0], [1], [0, 0, 1, 1], [], []>} : vector<16x16xbf16>, vector<16x32xbf16>, vector<16x32xf32> -> vector<16x32xf32>
    %c4_68 = arith.constant 4 : index
    %c0_69 = arith.constant 0 : index
    %c0_70 = arith.constant 0 : index
    %86 = vector.load %arg6[%c4_68, %c0_69, %c0_70] : memref<9x16x16xf32, #tpu.memory_space<vmem>>, vector<1x16x16xf32>
    %87 = vector.shape_cast %86 : vector<1x16x16xf32> to vector<16x16xf32>
    %cst_71 = arith.constant dense<0.000000e+00> : vector<16x32xf32>
    %88 = tpu.matmul %87, %85, %cst_71 {dimension_numbers = #tpu.dot_dimension_numbers<[1], [0], [0], [1], [0, 0, 1, 1], [], []>} : vector<16x16xf32>, vector<16x32xf32>, vector<16x32xf32> -> vector<16x32xf32>
    %89 = arith.addf %81, %88 : vector<16x32xf32>
    %cst_72 = arith.constant 0.000000e+00 : f32
    %90 = vector.broadcast %cst_72 : f32 to vector<16x32xf32>
    %91 = vector.extract_strided_slice %16 {offsets = [32, 0], sizes = [16, 16], strides = [1, 1]} : vector<64x16xbf16> to vector<16x16xbf16>
    %c0_73 = arith.constant 0 : index
    %c0_74 = arith.constant 0 : index
    %c0_75 = arith.constant 0 : index
    %92 = vector.load %arg4[%c0_73, %c0_74, %c0_75] : memref<9x16x32xbf16, #tpu.memory_space<vmem>>, vector<1x16x32xbf16>
    %93 = vector.shape_cast %92 : vector<1x16x32xbf16> to vector<16x32xbf16>
    %cst_76 = arith.constant dense<0.000000e+00> : vector<16x32xf32>
    %94 = tpu.matmul %91, %93, %cst_76 {dimension_numbers = #tpu.dot_dimension_numbers<[1], [0], [0], [1], [0, 0, 1, 1], [], []>} : vector<16x16xbf16>, vector<16x32xbf16>, vector<16x32xf32> -> vector<16x32xf32>
    %c1_77 = arith.constant 1 : index
    %c0_78 = arith.constant 0 : index
    %c0_79 = arith.constant 0 : index
    %95 = vector.load %arg6[%c1_77, %c0_78, %c0_79] : memref<9x16x16xf32, #tpu.memory_space<vmem>>, vector<1x16x16xf32>
    %96 = vector.shape_cast %95 : vector<1x16x16xf32> to vector<16x16xf32>
    %cst_80 = arith.constant dense<0.000000e+00> : vector<16x32xf32>
    %97 = tpu.matmul %96, %94, %cst_80 {dimension_numbers = #tpu.dot_dimension_numbers<[1], [0], [0], [1], [0, 0, 1, 1], [], []>} : vector<16x16xf32>, vector<16x32xf32>, vector<16x32xf32> -> vector<16x32xf32>
    %98 = arith.addf %90, %97 : vector<16x32xf32>
    %99 = vector.extract_strided_slice %16 {offsets = [48, 0], sizes = [16, 16], strides = [1, 1]} : vector<64x16xbf16> to vector<16x16xbf16>
    %c1_81 = arith.constant 1 : index
    %c0_82 = arith.constant 0 : index
    %c0_83 = arith.constant 0 : index
    %100 = vector.load %arg4[%c1_81, %c0_82, %c0_83] : memref<9x16x32xbf16, #tpu.memory_space<vmem>>, vector<1x16x32xbf16>
    %101 = vector.shape_cast %100 : vector<1x16x32xbf16> to vector<16x32xbf16>
    %cst_84 = arith.constant dense<0.000000e+00> : vector<16x32xf32>
    %102 = tpu.matmul %99, %101, %cst_84 {dimension_numbers = #tpu.dot_dimension_numbers<[1], [0], [0], [1], [0, 0, 1, 1], [], []>} : vector<16x16xbf16>, vector<16x32xbf16>, vector<16x32xf32> -> vector<16x32xf32>
    %c1_85 = arith.constant 1 : index
    %c0_86 = arith.constant 0 : index
    %c0_87 = arith.constant 0 : index
    %103 = vector.load %arg6[%c1_85, %c0_86, %c0_87] : memref<9x16x16xf32, #tpu.memory_space<vmem>>, vector<1x16x16xf32>
    %104 = vector.shape_cast %103 : vector<1x16x16xf32> to vector<16x16xf32>
    %cst_88 = arith.constant dense<0.000000e+00> : vector<16x32xf32>
    %105 = tpu.matmul %104, %102, %cst_88 {dimension_numbers = #tpu.dot_dimension_numbers<[1], [0], [0], [1], [0, 0, 1, 1], [], []>} : vector<16x16xf32>, vector<16x32xf32>, vector<16x32xf32> -> vector<16x32xf32>
    %106 = arith.addf %98, %105 : vector<16x32xf32>
    %107 = vector.extract_strided_slice %16 {offsets = [32, 0], sizes = [16, 16], strides = [1, 1]} : vector<64x16xbf16> to vector<16x16xbf16>
    %c2_89 = arith.constant 2 : index
    %c0_90 = arith.constant 0 : index
    %c0_91 = arith.constant 0 : index
    %108 = vector.load %arg4[%c2_89, %c0_90, %c0_91] : memref<9x16x32xbf16, #tpu.memory_space<vmem>>, vector<1x16x32xbf16>
    %109 = vector.shape_cast %108 : vector<1x16x32xbf16> to vector<16x32xbf16>
    %cst_92 = arith.constant dense<0.000000e+00> : vector<16x32xf32>
    %110 = tpu.matmul %107, %109, %cst_92 {dimension_numbers = #tpu.dot_dimension_numbers<[1], [0], [0], [1], [0, 0, 1, 1], [], []>} : vector<16x16xbf16>, vector<16x32xbf16>, vector<16x32xf32> -> vector<16x32xf32>
    %c2_93 = arith.constant 2 : index
    %c0_94 = arith.constant 0 : index
    %c0_95 = arith.constant 0 : index
    %111 = vector.load %arg6[%c2_93, %c0_94, %c0_95] : memref<9x16x16xf32, #tpu.memory_space<vmem>>, vector<1x16x16xf32>
    %112 = vector.shape_cast %111 : vector<1x16x16xf32> to vector<16x16xf32>
    %cst_96 = arith.constant dense<0.000000e+00> : vector<16x32xf32>
    %113 = tpu.matmul %112, %110, %cst_96 {dimension_numbers = #tpu.dot_dimension_numbers<[1], [0], [0], [1], [0, 0, 1, 1], [], []>} : vector<16x16xf32>, vector<16x32xf32>, vector<16x32xf32> -> vector<16x32xf32>
    %114 = arith.addf %106, %113 : vector<16x32xf32>
    %115 = vector.extract_strided_slice %16 {offsets = [0, 0], sizes = [16, 16], strides = [1, 1]} : vector<64x16xbf16> to vector<16x16xbf16>
    %c3_97 = arith.constant 3 : index
    %c0_98 = arith.constant 0 : index
    %c0_99 = arith.constant 0 : index
    %116 = vector.load %arg4[%c3_97, %c0_98, %c0_99] : memref<9x16x32xbf16, #tpu.memory_space<vmem>>, vector<1x16x32xbf16>
    %117 = vector.shape_cast %116 : vector<1x16x32xbf16> to vector<16x32xbf16>
    %cst_100 = arith.constant dense<0.000000e+00> : vector<16x32xf32>
    %118 = tpu.matmul %115, %117, %cst_100 {dimension_numbers = #tpu.dot_dimension_numbers<[1], [0], [0], [1], [0, 0, 1, 1], [], []>} : vector<16x16xbf16>, vector<16x32xbf16>, vector<16x32xf32> -> vector<16x32xf32>
    %c4_101 = arith.constant 4 : index
    %c0_102 = arith.constant 0 : index
    %c0_103 = arith.constant 0 : index
    %119 = vector.load %arg6[%c4_101, %c0_102, %c0_103] : memref<9x16x16xf32, #tpu.memory_space<vmem>>, vector<1x16x16xf32>
    %120 = vector.shape_cast %119 : vector<1x16x16xf32> to vector<16x16xf32>
    %cst_104 = arith.constant dense<0.000000e+00> : vector<16x32xf32>
    %121 = tpu.matmul %120, %118, %cst_104 {dimension_numbers = #tpu.dot_dimension_numbers<[1], [0], [0], [1], [0, 0, 1, 1], [], []>} : vector<16x16xf32>, vector<16x32xf32>, vector<16x32xf32> -> vector<16x32xf32>
    %122 = arith.addf %114, %121 : vector<16x32xf32>
    %123 = vector.extract_strided_slice %16 {offsets = [16, 0], sizes = [16, 16], strides = [1, 1]} : vector<64x16xbf16> to vector<16x16xbf16>
    %c4_105 = arith.constant 4 : index
    %c0_106 = arith.constant 0 : index
    %c0_107 = arith.constant 0 : index
    %124 = vector.load %arg4[%c4_105, %c0_106, %c0_107] : memref<9x16x32xbf16, #tpu.memory_space<vmem>>, vector<1x16x32xbf16>
    %125 = vector.shape_cast %124 : vector<1x16x32xbf16> to vector<16x32xbf16>
    %cst_108 = arith.constant dense<0.000000e+00> : vector<16x32xf32>
    %126 = tpu.matmul %123, %125, %cst_108 {dimension_numbers = #tpu.dot_dimension_numbers<[1], [0], [0], [1], [0, 0, 1, 1], [], []>} : vector<16x16xbf16>, vector<16x32xbf16>, vector<16x32xf32> -> vector<16x32xf32>
    %c4_109 = arith.constant 4 : index
    %c0_110 = arith.constant 0 : index
    %c0_111 = arith.constant 0 : index
    %127 = vector.load %arg6[%c4_109, %c0_110, %c0_111] : memref<9x16x16xf32, #tpu.memory_space<vmem>>, vector<1x16x16xf32>
    %128 = vector.shape_cast %127 : vector<1x16x16xf32> to vector<16x16xf32>
    %cst_112 = arith.constant dense<0.000000e+00> : vector<16x32xf32>
    %129 = tpu.matmul %128, %126, %cst_112 {dimension_numbers = #tpu.dot_dimension_numbers<[1], [0], [0], [1], [0, 0, 1, 1], [], []>} : vector<16x16xf32>, vector<16x32xf32>, vector<16x32xf32> -> vector<16x32xf32>
    %130 = arith.addf %122, %129 : vector<16x32xf32>
    %131 = vector.extract_strided_slice %16 {offsets = [0, 0], sizes = [16, 16], strides = [1, 1]} : vector<64x16xbf16> to vector<16x16xbf16>
    %c5_113 = arith.constant 5 : index
    %c0_114 = arith.constant 0 : index
    %c0_115 = arith.constant 0 : index
    %132 = vector.load %arg4[%c5_113, %c0_114, %c0_115] : memref<9x16x32xbf16, #tpu.memory_space<vmem>>, vector<1x16x32xbf16>
    %133 = vector.shape_cast %132 : vector<1x16x32xbf16> to vector<16x32xbf16>
    %cst_116 = arith.constant dense<0.000000e+00> : vector<16x32xf32>
    %134 = tpu.matmul %131, %133, %cst_116 {dimension_numbers = #tpu.dot_dimension_numbers<[1], [0], [0], [1], [0, 0, 1, 1], [], []>} : vector<16x16xbf16>, vector<16x32xbf16>, vector<16x32xf32> -> vector<16x32xf32>
    %c5_117 = arith.constant 5 : index
    %c0_118 = arith.constant 0 : index
    %c0_119 = arith.constant 0 : index
    %135 = vector.load %arg6[%c5_117, %c0_118, %c0_119] : memref<9x16x16xf32, #tpu.memory_space<vmem>>, vector<1x16x16xf32>
    %136 = vector.shape_cast %135 : vector<1x16x16xf32> to vector<16x16xf32>
    %cst_120 = arith.constant dense<0.000000e+00> : vector<16x32xf32>
    %137 = tpu.matmul %136, %134, %cst_120 {dimension_numbers = #tpu.dot_dimension_numbers<[1], [0], [0], [1], [0, 0, 1, 1], [], []>} : vector<16x16xf32>, vector<16x32xf32>, vector<16x32xf32> -> vector<16x32xf32>
    %138 = arith.addf %130, %137 : vector<16x32xf32>
    %139 = vector.extract_strided_slice %16 {offsets = [32, 0], sizes = [16, 16], strides = [1, 1]} : vector<64x16xbf16> to vector<16x16xbf16>
    %c6_121 = arith.constant 6 : index
    %c0_122 = arith.constant 0 : index
    %c0_123 = arith.constant 0 : index
    %140 = vector.load %arg4[%c6_121, %c0_122, %c0_123] : memref<9x16x32xbf16, #tpu.memory_space<vmem>>, vector<1x16x32xbf16>
    %141 = vector.shape_cast %140 : vector<1x16x32xbf16> to vector<16x32xbf16>
    %cst_124 = arith.constant dense<0.000000e+00> : vector<16x32xf32>
    %142 = tpu.matmul %139, %141, %cst_124 {dimension_numbers = #tpu.dot_dimension_numbers<[1], [0], [0], [1], [0, 0, 1, 1], [], []>} : vector<16x16xbf16>, vector<16x32xbf16>, vector<16x32xf32> -> vector<16x32xf32>
    %c4_125 = arith.constant 4 : index
    %c0_126 = arith.constant 0 : index
    %c0_127 = arith.constant 0 : index
    %143 = vector.load %arg6[%c4_125, %c0_126, %c0_127] : memref<9x16x16xf32, #tpu.memory_space<vmem>>, vector<1x16x16xf32>
    %144 = vector.shape_cast %143 : vector<1x16x16xf32> to vector<16x16xf32>
    %cst_128 = arith.constant dense<0.000000e+00> : vector<16x32xf32>
    %145 = tpu.matmul %144, %142, %cst_128 {dimension_numbers = #tpu.dot_dimension_numbers<[1], [0], [0], [1], [0, 0, 1, 1], [], []>} : vector<16x16xf32>, vector<16x32xf32>, vector<16x32xf32> -> vector<16x32xf32>
    %146 = arith.addf %138, %145 : vector<16x32xf32>
    %147 = vector.extract_strided_slice %16 {offsets = [48, 0], sizes = [16, 16], strides = [1, 1]} : vector<64x16xbf16> to vector<16x16xbf16>
    %c7_129 = arith.constant 7 : index
    %c0_130 = arith.constant 0 : index
    %c0_131 = arith.constant 0 : index
    %148 = vector.load %arg4[%c7_129, %c0_130, %c0_131] : memref<9x16x32xbf16, #tpu.memory_space<vmem>>, vector<1x16x32xbf16>
    %149 = vector.shape_cast %148 : vector<1x16x32xbf16> to vector<16x32xbf16>
    %cst_132 = arith.constant dense<0.000000e+00> : vector<16x32xf32>
    %150 = tpu.matmul %147, %149, %cst_132 {dimension_numbers = #tpu.dot_dimension_numbers<[1], [0], [0], [1], [0, 0, 1, 1], [], []>} : vector<16x16xbf16>, vector<16x32xbf16>, vector<16x32xf32> -> vector<16x32xf32>
    %c4_133 = arith.constant 4 : index
    %c0_134 = arith.constant 0 : index
    %c0_135 = arith.constant 0 : index
    %151 = vector.load %arg6[%c4_133, %c0_134, %c0_135] : memref<9x16x16xf32, #tpu.memory_space<vmem>>, vector<1x16x16xf32>
    %152 = vector.shape_cast %151 : vector<1x16x16xf32> to vector<16x16xf32>
    %cst_136 = arith.constant dense<0.000000e+00> : vector<16x32xf32>
    %153 = tpu.matmul %152, %150, %cst_136 {dimension_numbers = #tpu.dot_dimension_numbers<[1], [0], [0], [1], [0, 0, 1, 1], [], []>} : vector<16x16xf32>, vector<16x32xf32>, vector<16x32xf32> -> vector<16x32xf32>
    %154 = arith.addf %146, %153 : vector<16x32xf32>
    %155 = vector.extract_strided_slice %16 {offsets = [32, 0], sizes = [16, 16], strides = [1, 1]} : vector<64x16xbf16> to vector<16x16xbf16>
    %c8_137 = arith.constant 8 : index
    %c0_138 = arith.constant 0 : index
    %c0_139 = arith.constant 0 : index
    %156 = vector.load %arg4[%c8_137, %c0_138, %c0_139] : memref<9x16x32xbf16, #tpu.memory_space<vmem>>, vector<1x16x32xbf16>
    %157 = vector.shape_cast %156 : vector<1x16x32xbf16> to vector<16x32xbf16>
    %cst_140 = arith.constant dense<0.000000e+00> : vector<16x32xf32>
    %158 = tpu.matmul %155, %157, %cst_140 {dimension_numbers = #tpu.dot_dimension_numbers<[1], [0], [0], [1], [0, 0, 1, 1], [], []>} : vector<16x16xbf16>, vector<16x32xbf16>, vector<16x32xf32> -> vector<16x32xf32>
    %c5_141 = arith.constant 5 : index
    %c0_142 = arith.constant 0 : index
    %c0_143 = arith.constant 0 : index
    %159 = vector.load %arg6[%c5_141, %c0_142, %c0_143] : memref<9x16x16xf32, #tpu.memory_space<vmem>>, vector<1x16x16xf32>
    %160 = vector.shape_cast %159 : vector<1x16x16xf32> to vector<16x16xf32>
    %cst_144 = arith.constant dense<0.000000e+00> : vector<16x32xf32>
    %161 = tpu.matmul %160, %158, %cst_144 {dimension_numbers = #tpu.dot_dimension_numbers<[1], [0], [0], [1], [0, 0, 1, 1], [], []>} : vector<16x16xf32>, vector<16x32xf32>, vector<16x32xf32> -> vector<16x32xf32>
    %162 = arith.addf %154, %161 : vector<16x32xf32>
    %163 = arith.maximumf %89, %162 : vector<16x32xf32>
    %cst_145 = arith.constant 0.000000e+00 : f32
    %164 = vector.broadcast %cst_145 : f32 to vector<16x32xf32>
    %165 = vector.extract_strided_slice %16 {offsets = [16, 0], sizes = [16, 16], strides = [1, 1]} : vector<64x16xbf16> to vector<16x16xbf16>
    %c0_146 = arith.constant 0 : index
    %c0_147 = arith.constant 0 : index
    %c0_148 = arith.constant 0 : index
    %166 = vector.load %arg4[%c0_146, %c0_147, %c0_148] : memref<9x16x32xbf16, #tpu.memory_space<vmem>>, vector<1x16x32xbf16>
    %167 = vector.shape_cast %166 : vector<1x16x32xbf16> to vector<16x32xbf16>
    %cst_149 = arith.constant dense<0.000000e+00> : vector<16x32xf32>
    %168 = tpu.matmul %165, %167, %cst_149 {dimension_numbers = #tpu.dot_dimension_numbers<[1], [0], [0], [1], [0, 0, 1, 1], [], []>} : vector<16x16xbf16>, vector<16x32xbf16>, vector<16x32xf32> -> vector<16x32xf32>
    %c3_150 = arith.constant 3 : index
    %c0_151 = arith.constant 0 : index
    %c0_152 = arith.constant 0 : index
    %169 = vector.load %arg6[%c3_150, %c0_151, %c0_152] : memref<9x16x16xf32, #tpu.memory_space<vmem>>, vector<1x16x16xf32>
    %170 = vector.shape_cast %169 : vector<1x16x16xf32> to vector<16x16xf32>
    %cst_153 = arith.constant dense<0.000000e+00> : vector<16x32xf32>
    %171 = tpu.matmul %170, %168, %cst_153 {dimension_numbers = #tpu.dot_dimension_numbers<[1], [0], [0], [1], [0, 0, 1, 1], [], []>} : vector<16x16xf32>, vector<16x32xf32>, vector<16x32xf32> -> vector<16x32xf32>
    %172 = arith.addf %164, %171 : vector<16x32xf32>
    %173 = vector.extract_strided_slice %16 {offsets = [0, 0], sizes = [16, 16], strides = [1, 1]} : vector<64x16xbf16> to vector<16x16xbf16>
    %c1_154 = arith.constant 1 : index
    %c0_155 = arith.constant 0 : index
    %c0_156 = arith.constant 0 : index
    %174 = vector.load %arg4[%c1_154, %c0_155, %c0_156] : memref<9x16x32xbf16, #tpu.memory_space<vmem>>, vector<1x16x32xbf16>
    %175 = vector.shape_cast %174 : vector<1x16x32xbf16> to vector<16x32xbf16>
    %cst_157 = arith.constant dense<0.000000e+00> : vector<16x32xf32>
    %176 = tpu.matmul %173, %175, %cst_157 {dimension_numbers = #tpu.dot_dimension_numbers<[1], [0], [0], [1], [0, 0, 1, 1], [], []>} : vector<16x16xbf16>, vector<16x32xbf16>, vector<16x32xf32> -> vector<16x32xf32>
    %c4_158 = arith.constant 4 : index
    %c0_159 = arith.constant 0 : index
    %c0_160 = arith.constant 0 : index
    %177 = vector.load %arg6[%c4_158, %c0_159, %c0_160] : memref<9x16x16xf32, #tpu.memory_space<vmem>>, vector<1x16x16xf32>
    %178 = vector.shape_cast %177 : vector<1x16x16xf32> to vector<16x16xf32>
    %cst_161 = arith.constant dense<0.000000e+00> : vector<16x32xf32>
    %179 = tpu.matmul %178, %176, %cst_161 {dimension_numbers = #tpu.dot_dimension_numbers<[1], [0], [0], [1], [0, 0, 1, 1], [], []>} : vector<16x16xf32>, vector<16x32xf32>, vector<16x32xf32> -> vector<16x32xf32>
    %180 = arith.addf %172, %179 : vector<16x32xf32>
    %181 = vector.extract_strided_slice %16 {offsets = [16, 0], sizes = [16, 16], strides = [1, 1]} : vector<64x16xbf16> to vector<16x16xbf16>
    %c2_162 = arith.constant 2 : index
    %c0_163 = arith.constant 0 : index
    %c0_164 = arith.constant 0 : index
    %182 = vector.load %arg4[%c2_162, %c0_163, %c0_164] : memref<9x16x32xbf16, #tpu.memory_space<vmem>>, vector<1x16x32xbf16>
    %183 = vector.shape_cast %182 : vector<1x16x32xbf16> to vector<16x32xbf16>
    %cst_165 = arith.constant dense<0.000000e+00> : vector<16x32xf32>
    %184 = tpu.matmul %181, %183, %cst_165 {dimension_numbers = #tpu.dot_dimension_numbers<[1], [0], [0], [1], [0, 0, 1, 1], [], []>} : vector<16x16xbf16>, vector<16x32xbf16>, vector<16x32xf32> -> vector<16x32xf32>
    %c4_166 = arith.constant 4 : index
    %c0_167 = arith.constant 0 : index
    %c0_168 = arith.constant 0 : index
    %185 = vector.load %arg6[%c4_166, %c0_167, %c0_168] : memref<9x16x16xf32, #tpu.memory_space<vmem>>, vector<1x16x16xf32>
    %186 = vector.shape_cast %185 : vector<1x16x16xf32> to vector<16x16xf32>
    %cst_169 = arith.constant dense<0.000000e+00> : vector<16x32xf32>
    %187 = tpu.matmul %186, %184, %cst_169 {dimension_numbers = #tpu.dot_dimension_numbers<[1], [0], [0], [1], [0, 0, 1, 1], [], []>} : vector<16x16xf32>, vector<16x32xf32>, vector<16x32xf32> -> vector<16x32xf32>
    %188 = arith.addf %180, %187 : vector<16x32xf32>
    %189 = vector.extract_strided_slice %16 {offsets = [48, 0], sizes = [16, 16], strides = [1, 1]} : vector<64x16xbf16> to vector<16x16xbf16>
    %c3_170 = arith.constant 3 : index
    %c0_171 = arith.constant 0 : index
    %c0_172 = arith.constant 0 : index
    %190 = vector.load %arg4[%c3_170, %c0_171, %c0_172] : memref<9x16x32xbf16, #tpu.memory_space<vmem>>, vector<1x16x32xbf16>
    %191 = vector.shape_cast %190 : vector<1x16x32xbf16> to vector<16x32xbf16>
    %cst_173 = arith.constant dense<0.000000e+00> : vector<16x32xf32>
    %192 = tpu.matmul %189, %191, %cst_173 {dimension_numbers = #tpu.dot_dimension_numbers<[1], [0], [0], [1], [0, 0, 1, 1], [], []>} : vector<16x16xbf16>, vector<16x32xbf16>, vector<16x32xf32> -> vector<16x32xf32>
    %c3_174 = arith.constant 3 : index
    %c0_175 = arith.constant 0 : index
    %c0_176 = arith.constant 0 : index
    %193 = vector.load %arg6[%c3_174, %c0_175, %c0_176] : memref<9x16x16xf32, #tpu.memory_space<vmem>>, vector<1x16x16xf32>
    %194 = vector.shape_cast %193 : vector<1x16x16xf32> to vector<16x16xf32>
    %cst_177 = arith.constant dense<0.000000e+00> : vector<16x32xf32>
    %195 = tpu.matmul %194, %192, %cst_177 {dimension_numbers = #tpu.dot_dimension_numbers<[1], [0], [0], [1], [0, 0, 1, 1], [], []>} : vector<16x16xf32>, vector<16x32xf32>, vector<16x32xf32> -> vector<16x32xf32>
    %196 = arith.addf %188, %195 : vector<16x32xf32>
    %197 = vector.extract_strided_slice %16 {offsets = [32, 0], sizes = [16, 16], strides = [1, 1]} : vector<64x16xbf16> to vector<16x16xbf16>
    %c4_178 = arith.constant 4 : index
    %c0_179 = arith.constant 0 : index
    %c0_180 = arith.constant 0 : index
    %198 = vector.load %arg4[%c4_178, %c0_179, %c0_180] : memref<9x16x32xbf16, #tpu.memory_space<vmem>>, vector<1x16x32xbf16>
    %199 = vector.shape_cast %198 : vector<1x16x32xbf16> to vector<16x32xbf16>
    %cst_181 = arith.constant dense<0.000000e+00> : vector<16x32xf32>
    %200 = tpu.matmul %197, %199, %cst_181 {dimension_numbers = #tpu.dot_dimension_numbers<[1], [0], [0], [1], [0, 0, 1, 1], [], []>} : vector<16x16xbf16>, vector<16x32xbf16>, vector<16x32xf32> -> vector<16x32xf32>
    %c4_182 = arith.constant 4 : index
    %c0_183 = arith.constant 0 : index
    %c0_184 = arith.constant 0 : index
    %201 = vector.load %arg6[%c4_182, %c0_183, %c0_184] : memref<9x16x16xf32, #tpu.memory_space<vmem>>, vector<1x16x16xf32>
    %202 = vector.shape_cast %201 : vector<1x16x16xf32> to vector<16x16xf32>
    %cst_185 = arith.constant dense<0.000000e+00> : vector<16x32xf32>
    %203 = tpu.matmul %202, %200, %cst_185 {dimension_numbers = #tpu.dot_dimension_numbers<[1], [0], [0], [1], [0, 0, 1, 1], [], []>} : vector<16x16xf32>, vector<16x32xf32>, vector<16x32xf32> -> vector<16x32xf32>
    %204 = arith.addf %196, %203 : vector<16x32xf32>
    %205 = vector.extract_strided_slice %16 {offsets = [48, 0], sizes = [16, 16], strides = [1, 1]} : vector<64x16xbf16> to vector<16x16xbf16>
    %c5_186 = arith.constant 5 : index
    %c0_187 = arith.constant 0 : index
    %c0_188 = arith.constant 0 : index
    %206 = vector.load %arg4[%c5_186, %c0_187, %c0_188] : memref<9x16x32xbf16, #tpu.memory_space<vmem>>, vector<1x16x32xbf16>
    %207 = vector.shape_cast %206 : vector<1x16x32xbf16> to vector<16x32xbf16>
    %cst_189 = arith.constant dense<0.000000e+00> : vector<16x32xf32>
    %208 = tpu.matmul %205, %207, %cst_189 {dimension_numbers = #tpu.dot_dimension_numbers<[1], [0], [0], [1], [0, 0, 1, 1], [], []>} : vector<16x16xbf16>, vector<16x32xbf16>, vector<16x32xf32> -> vector<16x32xf32>
    %c4_190 = arith.constant 4 : index
    %c0_191 = arith.constant 0 : index
    %c0_192 = arith.constant 0 : index
    %209 = vector.load %arg6[%c4_190, %c0_191, %c0_192] : memref<9x16x16xf32, #tpu.memory_space<vmem>>, vector<1x16x16xf32>
    %210 = vector.shape_cast %209 : vector<1x16x16xf32> to vector<16x16xf32>
    %cst_193 = arith.constant dense<0.000000e+00> : vector<16x32xf32>
    %211 = tpu.matmul %210, %208, %cst_193 {dimension_numbers = #tpu.dot_dimension_numbers<[1], [0], [0], [1], [0, 0, 1, 1], [], []>} : vector<16x16xf32>, vector<16x32xf32>, vector<16x32xf32> -> vector<16x32xf32>
    %212 = arith.addf %204, %211 : vector<16x32xf32>
    %213 = vector.extract_strided_slice %16 {offsets = [16, 0], sizes = [16, 16], strides = [1, 1]} : vector<64x16xbf16> to vector<16x16xbf16>
    %c6_194 = arith.constant 6 : index
    %c0_195 = arith.constant 0 : index
    %c0_196 = arith.constant 0 : index
    %214 = vector.load %arg4[%c6_194, %c0_195, %c0_196] : memref<9x16x32xbf16, #tpu.memory_space<vmem>>, vector<1x16x32xbf16>
    %215 = vector.shape_cast %214 : vector<1x16x32xbf16> to vector<16x32xbf16>
    %cst_197 = arith.constant dense<0.000000e+00> : vector<16x32xf32>
    %216 = tpu.matmul %213, %215, %cst_197 {dimension_numbers = #tpu.dot_dimension_numbers<[1], [0], [0], [1], [0, 0, 1, 1], [], []>} : vector<16x16xbf16>, vector<16x32xbf16>, vector<16x32xf32> -> vector<16x32xf32>
    %c6_198 = arith.constant 6 : index
    %c0_199 = arith.constant 0 : index
    %c0_200 = arith.constant 0 : index
    %217 = vector.load %arg6[%c6_198, %c0_199, %c0_200] : memref<9x16x16xf32, #tpu.memory_space<vmem>>, vector<1x16x16xf32>
    %218 = vector.shape_cast %217 : vector<1x16x16xf32> to vector<16x16xf32>
    %cst_201 = arith.constant dense<0.000000e+00> : vector<16x32xf32>
    %219 = tpu.matmul %218, %216, %cst_201 {dimension_numbers = #tpu.dot_dimension_numbers<[1], [0], [0], [1], [0, 0, 1, 1], [], []>} : vector<16x16xf32>, vector<16x32xf32>, vector<16x32xf32> -> vector<16x32xf32>
    %220 = arith.addf %212, %219 : vector<16x32xf32>
    %221 = vector.extract_strided_slice %16 {offsets = [0, 0], sizes = [16, 16], strides = [1, 1]} : vector<64x16xbf16> to vector<16x16xbf16>
    %c7_202 = arith.constant 7 : index
    %c0_203 = arith.constant 0 : index
    %c0_204 = arith.constant 0 : index
    %222 = vector.load %arg4[%c7_202, %c0_203, %c0_204] : memref<9x16x32xbf16, #tpu.memory_space<vmem>>, vector<1x16x32xbf16>
    %223 = vector.shape_cast %222 : vector<1x16x32xbf16> to vector<16x32xbf16>
    %cst_205 = arith.constant dense<0.000000e+00> : vector<16x32xf32>
    %224 = tpu.matmul %221, %223, %cst_205 {dimension_numbers = #tpu.dot_dimension_numbers<[1], [0], [0], [1], [0, 0, 1, 1], [], []>} : vector<16x16xbf16>, vector<16x32xbf16>, vector<16x32xf32> -> vector<16x32xf32>
    %c7_206 = arith.constant 7 : index
    %c0_207 = arith.constant 0 : index
    %c0_208 = arith.constant 0 : index
    %225 = vector.load %arg6[%c7_206, %c0_207, %c0_208] : memref<9x16x16xf32, #tpu.memory_space<vmem>>, vector<1x16x16xf32>
    %226 = vector.shape_cast %225 : vector<1x16x16xf32> to vector<16x16xf32>
    %cst_209 = arith.constant dense<0.000000e+00> : vector<16x32xf32>
    %227 = tpu.matmul %226, %224, %cst_209 {dimension_numbers = #tpu.dot_dimension_numbers<[1], [0], [0], [1], [0, 0, 1, 1], [], []>} : vector<16x16xf32>, vector<16x32xf32>, vector<16x32xf32> -> vector<16x32xf32>
    %228 = arith.addf %220, %227 : vector<16x32xf32>
    %229 = vector.extract_strided_slice %16 {offsets = [16, 0], sizes = [16, 16], strides = [1, 1]} : vector<64x16xbf16> to vector<16x16xbf16>
    %c8_210 = arith.constant 8 : index
    %c0_211 = arith.constant 0 : index
    %c0_212 = arith.constant 0 : index
    %230 = vector.load %arg4[%c8_210, %c0_211, %c0_212] : memref<9x16x32xbf16, #tpu.memory_space<vmem>>, vector<1x16x32xbf16>
    %231 = vector.shape_cast %230 : vector<1x16x32xbf16> to vector<16x32xbf16>
    %cst_213 = arith.constant dense<0.000000e+00> : vector<16x32xf32>
    %232 = tpu.matmul %229, %231, %cst_213 {dimension_numbers = #tpu.dot_dimension_numbers<[1], [0], [0], [1], [0, 0, 1, 1], [], []>} : vector<16x16xbf16>, vector<16x32xbf16>, vector<16x32xf32> -> vector<16x32xf32>
    %c7_214 = arith.constant 7 : index
    %c0_215 = arith.constant 0 : index
    %c0_216 = arith.constant 0 : index
    %233 = vector.load %arg6[%c7_214, %c0_215, %c0_216] : memref<9x16x16xf32, #tpu.memory_space<vmem>>, vector<1x16x16xf32>
    %234 = vector.shape_cast %233 : vector<1x16x16xf32> to vector<16x16xf32>
    %cst_217 = arith.constant dense<0.000000e+00> : vector<16x32xf32>
    %235 = tpu.matmul %234, %232, %cst_217 {dimension_numbers = #tpu.dot_dimension_numbers<[1], [0], [0], [1], [0, 0, 1, 1], [], []>} : vector<16x16xf32>, vector<16x32xf32>, vector<16x32xf32> -> vector<16x32xf32>
    %236 = arith.addf %228, %235 : vector<16x32xf32>
    %237 = arith.maximumf %163, %236 : vector<16x32xf32>
    %cst_218 = arith.constant 0.000000e+00 : f32
    %238 = vector.broadcast %cst_218 : f32 to vector<16x32xf32>
    %239 = vector.extract_strided_slice %16 {offsets = [0, 0], sizes = [16, 16], strides = [1, 1]} : vector<64x16xbf16> to vector<16x16xbf16>
    %c0_219 = arith.constant 0 : index
    %c0_220 = arith.constant 0 : index
    %c0_221 = arith.constant 0 : index
    %240 = vector.load %arg4[%c0_219, %c0_220, %c0_221] : memref<9x16x32xbf16, #tpu.memory_space<vmem>>, vector<1x16x32xbf16>
    %241 = vector.shape_cast %240 : vector<1x16x32xbf16> to vector<16x32xbf16>
    %cst_222 = arith.constant dense<0.000000e+00> : vector<16x32xf32>
    %242 = tpu.matmul %239, %241, %cst_222 {dimension_numbers = #tpu.dot_dimension_numbers<[1], [0], [0], [1], [0, 0, 1, 1], [], []>} : vector<16x16xbf16>, vector<16x32xbf16>, vector<16x32xf32> -> vector<16x32xf32>
    %c4_223 = arith.constant 4 : index
    %c0_224 = arith.constant 0 : index
    %c0_225 = arith.constant 0 : index
    %243 = vector.load %arg6[%c4_223, %c0_224, %c0_225] : memref<9x16x16xf32, #tpu.memory_space<vmem>>, vector<1x16x16xf32>
    %244 = vector.shape_cast %243 : vector<1x16x16xf32> to vector<16x16xf32>
    %cst_226 = arith.constant dense<0.000000e+00> : vector<16x32xf32>
    %245 = tpu.matmul %244, %242, %cst_226 {dimension_numbers = #tpu.dot_dimension_numbers<[1], [0], [0], [1], [0, 0, 1, 1], [], []>} : vector<16x16xf32>, vector<16x32xf32>, vector<16x32xf32> -> vector<16x32xf32>
    %246 = arith.addf %238, %245 : vector<16x32xf32>
    %247 = vector.extract_strided_slice %16 {offsets = [16, 0], sizes = [16, 16], strides = [1, 1]} : vector<64x16xbf16> to vector<16x16xbf16>
    %c1_227 = arith.constant 1 : index
    %c0_228 = arith.constant 0 : index
    %c0_229 = arith.constant 0 : index
    %248 = vector.load %arg4[%c1_227, %c0_228, %c0_229] : memref<9x16x32xbf16, #tpu.memory_space<vmem>>, vector<1x16x32xbf16>
    %249 = vector.shape_cast %248 : vector<1x16x32xbf16> to vector<16x32xbf16>
    %cst_230 = arith.constant dense<0.000000e+00> : vector<16x32xf32>
    %250 = tpu.matmul %247, %249, %cst_230 {dimension_numbers = #tpu.dot_dimension_numbers<[1], [0], [0], [1], [0, 0, 1, 1], [], []>} : vector<16x16xbf16>, vector<16x32xbf16>, vector<16x32xf32> -> vector<16x32xf32>
    %c4_231 = arith.constant 4 : index
    %c0_232 = arith.constant 0 : index
    %c0_233 = arith.constant 0 : index
    %251 = vector.load %arg6[%c4_231, %c0_232, %c0_233] : memref<9x16x16xf32, #tpu.memory_space<vmem>>, vector<1x16x16xf32>
    %252 = vector.shape_cast %251 : vector<1x16x16xf32> to vector<16x16xf32>
    %cst_234 = arith.constant dense<0.000000e+00> : vector<16x32xf32>
    %253 = tpu.matmul %252, %250, %cst_234 {dimension_numbers = #tpu.dot_dimension_numbers<[1], [0], [0], [1], [0, 0, 1, 1], [], []>} : vector<16x16xf32>, vector<16x32xf32>, vector<16x32xf32> -> vector<16x32xf32>
    %254 = arith.addf %246, %253 : vector<16x32xf32>
    %255 = vector.extract_strided_slice %16 {offsets = [0, 0], sizes = [16, 16], strides = [1, 1]} : vector<64x16xbf16> to vector<16x16xbf16>
    %c2_235 = arith.constant 2 : index
    %c0_236 = arith.constant 0 : index
    %c0_237 = arith.constant 0 : index
    %256 = vector.load %arg4[%c2_235, %c0_236, %c0_237] : memref<9x16x32xbf16, #tpu.memory_space<vmem>>, vector<1x16x32xbf16>
    %257 = vector.shape_cast %256 : vector<1x16x32xbf16> to vector<16x32xbf16>
    %cst_238 = arith.constant dense<0.000000e+00> : vector<16x32xf32>
    %258 = tpu.matmul %255, %257, %cst_238 {dimension_numbers = #tpu.dot_dimension_numbers<[1], [0], [0], [1], [0, 0, 1, 1], [], []>} : vector<16x16xbf16>, vector<16x32xbf16>, vector<16x32xf32> -> vector<16x32xf32>
    %c5_239 = arith.constant 5 : index
    %c0_240 = arith.constant 0 : index
    %c0_241 = arith.constant 0 : index
    %259 = vector.load %arg6[%c5_239, %c0_240, %c0_241] : memref<9x16x16xf32, #tpu.memory_space<vmem>>, vector<1x16x16xf32>
    %260 = vector.shape_cast %259 : vector<1x16x16xf32> to vector<16x16xf32>
    %cst_242 = arith.constant dense<0.000000e+00> : vector<16x32xf32>
    %261 = tpu.matmul %260, %258, %cst_242 {dimension_numbers = #tpu.dot_dimension_numbers<[1], [0], [0], [1], [0, 0, 1, 1], [], []>} : vector<16x16xf32>, vector<16x32xf32>, vector<16x32xf32> -> vector<16x32xf32>
    %262 = arith.addf %254, %261 : vector<16x32xf32>
    %263 = vector.extract_strided_slice %16 {offsets = [32, 0], sizes = [16, 16], strides = [1, 1]} : vector<64x16xbf16> to vector<16x16xbf16>
    %c3_243 = arith.constant 3 : index
    %c0_244 = arith.constant 0 : index
    %c0_245 = arith.constant 0 : index
    %264 = vector.load %arg4[%c3_243, %c0_244, %c0_245] : memref<9x16x32xbf16, #tpu.memory_space<vmem>>, vector<1x16x32xbf16>
    %265 = vector.shape_cast %264 : vector<1x16x32xbf16> to vector<16x32xbf16>
    %cst_246 = arith.constant dense<0.000000e+00> : vector<16x32xf32>
    %266 = tpu.matmul %263, %265, %cst_246 {dimension_numbers = #tpu.dot_dimension_numbers<[1], [0], [0], [1], [0, 0, 1, 1], [], []>} : vector<16x16xbf16>, vector<16x32xbf16>, vector<16x32xf32> -> vector<16x32xf32>
    %c4_247 = arith.constant 4 : index
    %c0_248 = arith.constant 0 : index
    %c0_249 = arith.constant 0 : index
    %267 = vector.load %arg6[%c4_247, %c0_248, %c0_249] : memref<9x16x16xf32, #tpu.memory_space<vmem>>, vector<1x16x16xf32>
    %268 = vector.shape_cast %267 : vector<1x16x16xf32> to vector<16x16xf32>
    %cst_250 = arith.constant dense<0.000000e+00> : vector<16x32xf32>
    %269 = tpu.matmul %268, %266, %cst_250 {dimension_numbers = #tpu.dot_dimension_numbers<[1], [0], [0], [1], [0, 0, 1, 1], [], []>} : vector<16x16xf32>, vector<16x32xf32>, vector<16x32xf32> -> vector<16x32xf32>
    %270 = arith.addf %262, %269 : vector<16x32xf32>
    %271 = vector.extract_strided_slice %16 {offsets = [48, 0], sizes = [16, 16], strides = [1, 1]} : vector<64x16xbf16> to vector<16x16xbf16>
    %c4_251 = arith.constant 4 : index
    %c0_252 = arith.constant 0 : index
    %c0_253 = arith.constant 0 : index
    %272 = vector.load %arg4[%c4_251, %c0_252, %c0_253] : memref<9x16x32xbf16, #tpu.memory_space<vmem>>, vector<1x16x32xbf16>
    %273 = vector.shape_cast %272 : vector<1x16x32xbf16> to vector<16x32xbf16>
    %cst_254 = arith.constant dense<0.000000e+00> : vector<16x32xf32>
    %274 = tpu.matmul %271, %273, %cst_254 {dimension_numbers = #tpu.dot_dimension_numbers<[1], [0], [0], [1], [0, 0, 1, 1], [], []>} : vector<16x16xbf16>, vector<16x32xbf16>, vector<16x32xf32> -> vector<16x32xf32>
    %c4_255 = arith.constant 4 : index
    %c0_256 = arith.constant 0 : index
    %c0_257 = arith.constant 0 : index
    %275 = vector.load %arg6[%c4_255, %c0_256, %c0_257] : memref<9x16x16xf32, #tpu.memory_space<vmem>>, vector<1x16x16xf32>
    %276 = vector.shape_cast %275 : vector<1x16x16xf32> to vector<16x16xf32>
    %cst_258 = arith.constant dense<0.000000e+00> : vector<16x32xf32>
    %277 = tpu.matmul %276, %274, %cst_258 {dimension_numbers = #tpu.dot_dimension_numbers<[1], [0], [0], [1], [0, 0, 1, 1], [], []>} : vector<16x16xf32>, vector<16x32xf32>, vector<16x32xf32> -> vector<16x32xf32>
    %278 = arith.addf %270, %277 : vector<16x32xf32>
    %279 = vector.extract_strided_slice %16 {offsets = [32, 0], sizes = [16, 16], strides = [1, 1]} : vector<64x16xbf16> to vector<16x16xbf16>
    %c5_259 = arith.constant 5 : index
    %c0_260 = arith.constant 0 : index
    %c0_261 = arith.constant 0 : index
    %280 = vector.load %arg4[%c5_259, %c0_260, %c0_261] : memref<9x16x32xbf16, #tpu.memory_space<vmem>>, vector<1x16x32xbf16>
    %281 = vector.shape_cast %280 : vector<1x16x32xbf16> to vector<16x32xbf16>
    %cst_262 = arith.constant dense<0.000000e+00> : vector<16x32xf32>
    %282 = tpu.matmul %279, %281, %cst_262 {dimension_numbers = #tpu.dot_dimension_numbers<[1], [0], [0], [1], [0, 0, 1, 1], [], []>} : vector<16x16xbf16>, vector<16x32xbf16>, vector<16x32xf32> -> vector<16x32xf32>
    %c5_263 = arith.constant 5 : index
    %c0_264 = arith.constant 0 : index
    %c0_265 = arith.constant 0 : index
    %283 = vector.load %arg6[%c5_263, %c0_264, %c0_265] : memref<9x16x16xf32, #tpu.memory_space<vmem>>, vector<1x16x16xf32>
    %284 = vector.shape_cast %283 : vector<1x16x16xf32> to vector<16x16xf32>
    %cst_266 = arith.constant dense<0.000000e+00> : vector<16x32xf32>
    %285 = tpu.matmul %284, %282, %cst_266 {dimension_numbers = #tpu.dot_dimension_numbers<[1], [0], [0], [1], [0, 0, 1, 1], [], []>} : vector<16x16xf32>, vector<16x32xf32>, vector<16x32xf32> -> vector<16x32xf32>
    %286 = arith.addf %278, %285 : vector<16x32xf32>
    %287 = vector.extract_strided_slice %16 {offsets = [0, 0], sizes = [16, 16], strides = [1, 1]} : vector<64x16xbf16> to vector<16x16xbf16>
    %c6_267 = arith.constant 6 : index
    %c0_268 = arith.constant 0 : index
    %c0_269 = arith.constant 0 : index
    %288 = vector.load %arg4[%c6_267, %c0_268, %c0_269] : memref<9x16x32xbf16, #tpu.memory_space<vmem>>, vector<1x16x32xbf16>
    %289 = vector.shape_cast %288 : vector<1x16x32xbf16> to vector<16x32xbf16>
    %cst_270 = arith.constant dense<0.000000e+00> : vector<16x32xf32>
    %290 = tpu.matmul %287, %289, %cst_270 {dimension_numbers = #tpu.dot_dimension_numbers<[1], [0], [0], [1], [0, 0, 1, 1], [], []>} : vector<16x16xbf16>, vector<16x32xbf16>, vector<16x32xf32> -> vector<16x32xf32>
    %c7_271 = arith.constant 7 : index
    %c0_272 = arith.constant 0 : index
    %c0_273 = arith.constant 0 : index
    %291 = vector.load %arg6[%c7_271, %c0_272, %c0_273] : memref<9x16x16xf32, #tpu.memory_space<vmem>>, vector<1x16x16xf32>
    %292 = vector.shape_cast %291 : vector<1x16x16xf32> to vector<16x16xf32>
    %cst_274 = arith.constant dense<0.000000e+00> : vector<16x32xf32>
    %293 = tpu.matmul %292, %290, %cst_274 {dimension_numbers = #tpu.dot_dimension_numbers<[1], [0], [0], [1], [0, 0, 1, 1], [], []>} : vector<16x16xf32>, vector<16x32xf32>, vector<16x32xf32> -> vector<16x32xf32>
    %294 = arith.addf %286, %293 : vector<16x32xf32>
    %295 = vector.extract_strided_slice %16 {offsets = [16, 0], sizes = [16, 16], strides = [1, 1]} : vector<64x16xbf16> to vector<16x16xbf16>
    %c7_275 = arith.constant 7 : index
    %c0_276 = arith.constant 0 : index
    %c0_277 = arith.constant 0 : index
    %296 = vector.load %arg4[%c7_275, %c0_276, %c0_277] : memref<9x16x32xbf16, #tpu.memory_space<vmem>>, vector<1x16x32xbf16>
    %297 = vector.shape_cast %296 : vector<1x16x32xbf16> to vector<16x32xbf16>
    %cst_278 = arith.constant dense<0.000000e+00> : vector<16x32xf32>
    %298 = tpu.matmul %295, %297, %cst_278 {dimension_numbers = #tpu.dot_dimension_numbers<[1], [0], [0], [1], [0, 0, 1, 1], [], []>} : vector<16x16xbf16>, vector<16x32xbf16>, vector<16x32xf32> -> vector<16x32xf32>
    %c7_279 = arith.constant 7 : index
    %c0_280 = arith.constant 0 : index
    %c0_281 = arith.constant 0 : index
    %299 = vector.load %arg6[%c7_279, %c0_280, %c0_281] : memref<9x16x16xf32, #tpu.memory_space<vmem>>, vector<1x16x16xf32>
    %300 = vector.shape_cast %299 : vector<1x16x16xf32> to vector<16x16xf32>
    %cst_282 = arith.constant dense<0.000000e+00> : vector<16x32xf32>
    %301 = tpu.matmul %300, %298, %cst_282 {dimension_numbers = #tpu.dot_dimension_numbers<[1], [0], [0], [1], [0, 0, 1, 1], [], []>} : vector<16x16xf32>, vector<16x32xf32>, vector<16x32xf32> -> vector<16x32xf32>
    %302 = arith.addf %294, %301 : vector<16x32xf32>
    %303 = vector.extract_strided_slice %16 {offsets = [0, 0], sizes = [16, 16], strides = [1, 1]} : vector<64x16xbf16> to vector<16x16xbf16>
    %c8_283 = arith.constant 8 : index
    %c0_284 = arith.constant 0 : index
    %c0_285 = arith.constant 0 : index
    %304 = vector.load %arg4[%c8_283, %c0_284, %c0_285] : memref<9x16x32xbf16, #tpu.memory_space<vmem>>, vector<1x16x32xbf16>
    %305 = vector.shape_cast %304 : vector<1x16x32xbf16> to vector<16x32xbf16>
    %cst_286 = arith.constant dense<0.000000e+00> : vector<16x32xf32>
    %306 = tpu.matmul %303, %305, %cst_286 {dimension_numbers = #tpu.dot_dimension_numbers<[1], [0], [0], [1], [0, 0, 1, 1], [], []>} : vector<16x16xbf16>, vector<16x32xbf16>, vector<16x32xf32> -> vector<16x32xf32>
    %c8_287 = arith.constant 8 : index
    %c0_288 = arith.constant 0 : index
    %c0_289 = arith.constant 0 : index
    %307 = vector.load %arg6[%c8_287, %c0_288, %c0_289] : memref<9x16x16xf32, #tpu.memory_space<vmem>>, vector<1x16x16xf32>
    %308 = vector.shape_cast %307 : vector<1x16x16xf32> to vector<16x16xf32>
    %cst_290 = arith.constant dense<0.000000e+00> : vector<16x32xf32>
    %309 = tpu.matmul %308, %306, %cst_290 {dimension_numbers = #tpu.dot_dimension_numbers<[1], [0], [0], [1], [0, 0, 1, 1], [], []>} : vector<16x16xf32>, vector<16x32xf32>, vector<16x32xf32> -> vector<16x32xf32>
    %310 = arith.addf %302, %309 : vector<16x32xf32>
    %311 = arith.maximumf %237, %310 : vector<16x32xf32>
    %c0_291 = arith.constant 0 : index
    %c0_292 = arith.constant 0 : index
    %312 = vector.load %arg5[%c0_291, %c0_292] : memref<1x32xf32, #tpu.memory_space<vmem>>, vector<1x32xf32>
    %313 = vector.broadcast %312 : vector<1x32xf32> to vector<16x32xf32>
    %314 = arith.addf %311, %313 : vector<16x32xf32>
    %cst_293 = arith.constant 0.000000e+00 : f32
    %315 = vector.broadcast %cst_293 : f32 to vector<16x32xf32>
    %316 = arith.maximumf %314, %315 : vector<16x32xf32>
    %317 = arith.truncf %316 : vector<16x32xf32> to vector<16x32xbf16>
    %c0_294 = arith.constant 0 : index
    %c0_295 = arith.constant 0 : index
    %318 = vector.load %arg7[%c0_294, %c0_295] : memref<32x64xbf16, #tpu.memory_space<vmem>>, vector<32x64xbf16>
    %cst_296 = arith.constant dense<0.000000e+00> : vector<16x64xf32>
    %319 = tpu.matmul %317, %318, %cst_296 {dimension_numbers = #tpu.dot_dimension_numbers<[1], [0], [0], [1], [0, 0, 1, 1], [], []>} : vector<16x32xbf16>, vector<32x64xbf16>, vector<16x64xf32> -> vector<16x64xf32>
    %c0_297 = arith.constant 0 : index
    %c0_298 = arith.constant 0 : index
    %320 = vector.load %arg8[%c0_297, %c0_298] : memref<1x64xf32, #tpu.memory_space<vmem>>, vector<1x64xf32>
    %321 = vector.broadcast %320 : vector<1x64xf32> to vector<16x64xf32>
    %322 = arith.addf %319, %321 : vector<16x64xf32>
    %cst_299 = arith.constant 0.000000e+00 : f32
    %323 = vector.broadcast %cst_299 : f32 to vector<16x64xf32>
    %324 = arith.maximumf %322, %323 : vector<16x64xf32>
    %325 = arith.truncf %324 : vector<16x64xf32> to vector<16x64xbf16>
    %c0_300 = arith.constant 0 : index
    %c0_301 = arith.constant 0 : index
    %326 = vector.load %arg9[%c0_300, %c0_301] : memref<64x16xbf16, #tpu.memory_space<vmem>>, vector<64x16xbf16>
    %cst_302 = arith.constant dense<0.000000e+00> : vector<16x16xf32>
    %327 = tpu.matmul %325, %326, %cst_302 {dimension_numbers = #tpu.dot_dimension_numbers<[1], [0], [0], [1], [0, 0, 1, 1], [], []>} : vector<16x64xbf16>, vector<64x16xbf16>, vector<16x16xf32> -> vector<16x16xf32>
    %c0_303 = arith.constant 0 : index
    %c0_304 = arith.constant 0 : index
    %328 = vector.load %arg10[%c0_303, %c0_304] : memref<1x16xf32, #tpu.memory_space<vmem>>, vector<1x16xf32>
    %329 = vector.broadcast %328 : vector<1x16xf32> to vector<16x16xf32>
    %330 = arith.addf %327, %329 : vector<16x16xf32>
    %cst_305 = arith.constant 0.000000e+00 : f32
    %331 = vector.broadcast %cst_305 : f32 to vector<16x16xf32>
    %332 = arith.subf %331, %330 : vector<16x16xf32>
    %333 = math.exp %332 : vector<16x16xf32>
    %cst_306 = arith.constant 1.000000e+00 : f32
    %334 = vector.broadcast %cst_306 : f32 to vector<16x16xf32>
    %335 = arith.addf %334, %333 : vector<16x16xf32>
    %cst_307 = arith.constant 1.000000e+00 : f32
    %336 = vector.broadcast %cst_307 : f32 to vector<16x16xf32>
    %337 = arith.divf %336, %335 : vector<16x16xf32>
    %c0_308 = arith.constant 0 : index
    %c0_309 = arith.constant 0 : index
    %c0_310 = arith.constant 0 : index
    %338 = vector.load %arg11[%c0_308, %c0_309, %c0_310] : memref<1x16x16xf32, #tpu.memory_space<vmem>>, vector<1x16x16xf32>
    %339 = vector.shape_cast %338 : vector<1x16x16xf32> to vector<16x16xf32>
    %340 = vector.shape_cast %337 : vector<16x16xf32> to vector<1x16x16xf32>
    tpu.vector_store %arg11[%c0_308, %c0_309, %c0_310], %340 {strides = array<i32>} : memref<1x16x16xf32, #tpu.memory_space<vmem>>, vector<1x16x16xf32>,
    return
  }
  func.func @transform_0(%arg0: i32) -> (i32, i32, i32) {
    %c0_i32 = arith.constant 0 : i32
    %c0_i32_0 = arith.constant 0 : i32
    %c0_i32_1 = arith.constant 0 : i32
    return %arg0, %c0_i32, %c0_i32_0 : i32, i32, i32
  }
  func.func @transform_1(%arg0: i32) -> (i32, i32) {
    %c0_i32 = arith.constant 0 : i32
    %c0_i32_0 = arith.constant 0 : i32
    %c0_i32_1 = arith.constant 0 : i32
    return %c0_i32, %c0_i32_0 : i32, i32
  }
  func.func @transform_2(%arg0: i32) -> (i32, i32) {
    %c0_i32 = arith.constant 0 : i32
    %c0_i32_0 = arith.constant 0 : i32
    %c0_i32_1 = arith.constant 0 : i32
    return %c0_i32, %c0_i32_0 : i32, i32
  }
  func.func @transform_3(%arg0: i32) -> (i32, i32, i32) {
    %c0_i32 = arith.constant 0 : i32
    %c0_i32_0 = arith.constant 0 : i32
    %c0_i32_1 = arith.constant 0 : i32
    %c0_i32_2 = arith.constant 0 : i32
    return %c0_i32, %c0_i32_0, %c0_i32_1 : i32, i32, i32
  }
  func.func @transform_4(%arg0: i32) -> (i32, i32) {
    %c0_i32 = arith.constant 0 : i32
    %c0_i32_0 = arith.constant 0 : i32
    %c0_i32_1 = arith.constant 0 : i32
    return %c0_i32, %c0_i32_0 : i32, i32
  }
  func.func @transform_5(%arg0: i32) -> (i32, i32, i32) {
    %c0_i32 = arith.constant 0 : i32
    %c0_i32_0 = arith.constant 0 : i32
    %c0_i32_1 = arith.constant 0 : i32
    %c0_i32_2 = arith.constant 0 : i32
    return %c0_i32, %c0_i32_0, %c0_i32_1 : i32, i32, i32
  }
  func.func @transform_6(%arg0: i32) -> (i32, i32) {
    %c0_i32 = arith.constant 0 : i32
    %c0_i32_0 = arith.constant 0 : i32
    %c0_i32_1 = arith.constant 0 : i32
    return %c0_i32, %c0_i32_0 : i32, i32
  }
  func.func @transform_7(%arg0: i32) -> (i32, i32) {
    %c0_i32 = arith.constant 0 : i32
    %c0_i32_0 = arith.constant 0 : i32
    %c0_i32_1 = arith.constant 0 : i32
    return %c0_i32, %c0_i32_0 : i32, i32
  }
  func.func @transform_8(%arg0: i32) -> (i32, i32) {
    %c0_i32 = arith.constant 0 : i32
    %c0_i32_0 = arith.constant 0 : i32
    %c0_i32_1 = arith.constant 0 : i32
    return %c0_i32, %c0_i32_0 : i32, i32
  }
  func.func @transform_9(%arg0: i32) -> (i32, i32) {
    %c0_i32 = arith.constant 0 : i32
    %c0_i32_0 = arith.constant 0 : i32
    %c0_i32_1 = arith.constant 0 : i32
    return %c0_i32, %c0_i32_0 : i32, i32
  }
  func.func @transform_10(%arg0: i32) -> (i32, i32, i32) {
    %c0_i32 = arith.constant 0 : i32
    %c0_i32_0 = arith.constant 0 : i32
    %c0_i32_1 = arith.constant 0 : i32
    return %arg0, %c0_i32, %c0_i32_0 : i32, i32, i32
  }
}

</mosaic_0001>

<bundles_post_ra>
// kernel: tile.13
= control target key start
LH: loop header
LB: loop body
LE: loop exit
PB: predicated region body
PF: predicated region fallthrough
CT: control target
= control target key end

     0   :  { %s22_s0 = inlined_call_operand.vmem [shape: f32[16], index: 0, kind: input, shape index: {}]   ;;  %s23_s1 = inlined_call_operand.vmem [shape: f32[4,16], index: 1, kind: output, shape index: {}]  }
   0x1   :  { %v4_v0 = vld [vmem:[%s22_s0] ss:$0 sm:$0xff] }
   0x2   :  { %5 = vst [vmem:[%s23_s1] sm:$0xf] %v4_v0 }

// kernel: tile.14
= control target key start
LH: loop header
LB: loop body
LE: loop exit
PB: predicated region body
PF: predicated region fallthrough
CT: control target
= control target key end

     0   :  { %vm7_vm0 = vcmask 130048   ;;  %s37_s8 = smov 16   ;;  %s38_s9 = smov 32   ;;  %vm13_vm1 = vcmask 523648   ;;  %vm19_vm2 = vcmask 392448   ;;  %vm25_vm3 = vcmask 261248   ;;  %s55_s0 = inlined_call_operand.vmem [shape: f32[4,16], index: 0, kind: input, shape index: {}]   ;;  %s56_s1 = inlined_call_operand.vmem [shape: f32[1,64], index: 1, kind: output, shape index: {}]  }
   0x1   :  { %v4_v0 = vld [vmem:[%s55_s0] sm:$0xf]  ;;  %s36_s0 = smov 48  }
   0x2   :  { %5 = vst [vmem:[#allocation1] sm:$0xf] %v4_v0 }
   0x9   :  { %v10_v1 = vld [vmem:[#allocation1 + $0x3] sm:$0x1]   ;;  %v22_v2 = vld [vmem:[#allocation1 + $0x1] sm:$0x1]   ;;  %v6_v3 = vld [vmem:[#allocation1] sm:$0x1]  }
   0xa   :  { %11 = vrot.lane.b32.xlu0 %v10_v1, %s36_s0  ;;  %23 = vrot.lane.b32.xlu1 %v22_v2, %s37_s8  ;;  %v16_v4 = vld [vmem:[#allocation1 + $0x2] sm:$0x1]   ;;  %8 = vst.msk [vmem:[#allocation0] sm:$0x1] %vm7_vm0, %v6_v3  }
   0xe   :  { %17 = vrot.lane.b32.xlu0 %v16_v4, %s38_s9 }
  0x7c   :  { %v12_v5 = vpop.permute.xlu0 %11   ;;  %v24_v6 = vpop.permute.xlu1 %23  }
  0x7d   :  { %14 = vst.msk [vmem:[#allocation0] sm:$0x1] %vm13_vm1, %v12_v5  }
  0x80   :  { %v18_v7 = vpop.permute.xlu0 %17  }
  0x81   :  { %20 = vst.msk [vmem:[#allocation0] sm:$0x1] %vm19_vm2, %v18_v7  }
  0x82   :  { %26 = vst.msk [vmem:[#allocation0] sm:$0x1] %vm25_vm3, %v24_v6  }
  0x89   :  { %v30_v8 = vld [vmem:[#allocation0] sm:$0x1] }
  0x8a   :  { %32 = vst [vmem:[%s56_s1] sm:$0x1] %v30_v8 }

// kernel: convnet_forward.1
= control target key start
LH: loop header
LB: loop body
LE: loop exit
PB: predicated region body
PF: predicated region fallthrough
CT: control target
= control target key end

     0   :  { %s6690_s13 = smov 0   ;;  %s7361_s0 = inlined_call_operand.vmem [shape: bf16[2,256,9], index: 0, kind: input, shape index: {}]   ;;  %s7362_s1 = inlined_call_operand.vmem [shape: bf16[9,16], index: 1, kind: input, shape index: {}]   ;;  %s7363_s2 = inlined_call_operand.vmem [shape: f32[1,16], index: 2, kind: input, shape index: {}]   ;;  %s7364_s3 = inlined_call_operand.vmem [shape: bf16[9,16,32], index: 3, kind: input, shape index: {}]   ;;  %s7365_s4 = inlined_call_operand.vmem [shape: f32[1,32], index: 4, kind: input, shape index: {}]   ;;  %s7366_s5 = inlined_call_operand.vmem [shape: f32[9,16,16], index: 5, kind: input, shape index: {}]   ;;  %s7367_s6 = inlined_call_operand.vmem [shape: bf16[32,64], index: 6, kind: input, shape index: {}]   ;;  %s7368_s7 = inlined_call_operand.vmem [shape: f32[1,64], index: 7, kind: input, shape index: {}]   ;;  %s7369_s8 = inlined_call_operand.vmem [shape: bf16[64,16], index: 8, kind: input, shape index: {}]   ;;  %s7370_s9 = inlined_call_operand.vmem [shape: f32[1,16], index: 9, kind: input, shape index: {}]   ;;  %s7371_s10 = inlined_call_operand.vmem [shape: f32[2,16,16], index: 10, kind: output, shape index: {}]  }
   0x1 LB: > { %s5395_s14 = sadd.s32 4294967295, %s6630_s13   ;;  %p5399_p0 = scmp.ge.s32.totalorder %s6630_s13, 1  ;;  %s6630_s13 = sphi %s6690_s13, %s20_s13  }
   0x2   : > { %p312_p1 = scmp.lt.s32.totalorder %s6630_s13, 3 }
   0x4   : > { %p313_p2 = pnand %p5399_p0, %p312_p1 }
   0x5   : > { %v6584_v0 = vld [vmem:[%s7362_s1] sm:$0x1f] (!%p313_p2)   ;;  %vm529_vm0 = vcmask (!%p313_p2), 1043456   ;;  %vm530_vm1 = vcmask (!%p313_p2), 1044480   ;;  %p350_p3 = scmp.lt.s32.totalorder (!%p313_p2), %s5395_s14, 1  ;;  %v6632_v1 = vmov (!%p313_p2), 65535  }
   0x6   : > { %316 = sbr.rel (%p313_p2) target bundleno = 4065 (0xfe1), region = 60  ;;  %v531_v2 = vsel (!%p313_p2), %vm529_vm0, 4294967295, %v6632_v1  ;;  %vm480_vm2 = vcmask (!%p313_p2), 72704   ;;  %v6633_v21 = vmov (!%p313_p2), 0.0   ;;  %v6745_v22 = vld [vmem:[%s7364_s3] sm:$0xff] (!%p313_p2)   ;;  %v6753_v23 = vld [vmem:[%s7364_s3 + $0x8] sm:$0xff] (!%p313_p2)  }
   0x7   : > { %v532_v3 = vsel (!%p313_p2), %vm530_vm1, %v531_v2, 0  ;;  %5883 = vmatprep.subr.bf16.mxu1 (!%p313_p2), %v6633_v21  ;;  %vm6634_vm3 = vmmov (!%p313_p2), 0   ;;  %v5437_v59 = vld [vmem:[%s7363_s2] ss:$0 sm:$0xff] (!%p313_p2)  ;;  %vm756_vm4 = vcmask (!%p313_p2), 130048   ;;  %vm5194_vm5 = vcmask (!%p313_p2), 261120  }
   0x8   : > { %v534_v4 = vand.u32 (!%p313_p2), %v6584_v0, %v532_v3  ;;  %5884 = vmatpush3.bf16.msra.mxu1 (!%p313_p2), %v6753_v23  ;;  %5885 = vmatprep.mubr.msk.bf16.mxu1 (!%p313_p2), %vm6634_vm3, %v6633_v21  ;;  %vm5281_vm6 = vcmask (!%p313_p2), 523264  }
   0xa   : > { %5843 = vmatprep.subr.bf16.mxu0 (!%p313_p2), %v534_v4 }
   0xb   : > { %5844 = vmatpush3.bf16.msra.mxu0 (!%p313_p2), %v534_v4 }
   0xc   : > { %5877 = vmatprep.subr.bf16.mxu0 (!%p313_p2), %v6633_v21 }
   0xd   : > { %s7373_s14 = smov (!%p350_p3, %s5395_s14), 1 }
   0xe   : > { %s5600_s17 = sshll.u32 %s7373_s14, 7  ;;  %s5601_s23 = sshll.u32 %s7373_s14, 4 }
   0xf   : > { %s6707_s20 = scalar_lea.vmem %s7361_s0, %s5600_s17  ;;  %s359_s26 = scalar_lea.vmem %s7371_s10, %s5601_s23 }
  0x10   : > { %v6585_v5 = vld [vmem:[%s6707_s20] sm:$0xff]   ;;  %v6586_v6 = vld [vmem:[%s6707_s20 + $0x8] sm:$0xff]   ;;  %v6587_v7 = vld [vmem:[%s6707_s20 + $0x10] sm:$0xff]  }
  0x11   : > { %5845 = vmatprep.mubr.msk.bf16.mxu0 %vm480_vm2, %v6585_v5  ;;  %v6588_v8 = vld [vmem:[%s6707_s20 + $0x18] sm:$0xff]   ;;  %v6589_v9 = vld [vmem:[%s6707_s20 + $0x20] sm:$0xff]   ;;  %v6590_v10 = vld [vmem:[%s6707_s20 + $0x28] sm:$0xff]  }
  0x12   : > { %5846 = vmatmul.mubr.msk.bf16.vlgmr.msra.gmra.mrb[0].mxu0 %vm480_vm2, %v6586_v6  ;;  %v6591_v11 = vld [vmem:[%s6707_s20 + $0x30] sm:$0xff]   ;;  %v6592_v12 = vld [vmem:[%s6707_s20 + $0x38] sm:$0xff]   ;;  %v6593_v13 = vld [vmem:[%s6707_s20 + $0x40] sm:$0xff]  }
  0x13   : > { %5849 = vmatprep.mubr.msk.bf16.mxu0 %vm480_vm2, %v6587_v7  ;;  %v6594_v14 = vld [vmem:[%s6707_s20 + $0x48] sm:$0xff]   ;;  %v6595_v15 = vld [vmem:[%s6707_s20 + $0x50] sm:$0xff]   ;;  %v6596_v16 = vld [vmem:[%s6707_s20 + $0x58] sm:$0xff]   ;;  %5878 = vmatpush3.bf16.msra.mxu0 %v6745_v22 }
  0x14   : > { %v6597_v17 = vld [vmem:[%s6707_s20 + $0x60] sm:$0xff]   ;;  %v6598_v18 = vld [vmem:[%s6707_s20 + $0x68] sm:$0xff]   ;;  %v6599_v19 = vld [vmem:[%s6707_s20 + $0x70] sm:$0xff]   ;;  %5955 = vmatprep.subr.bf16.mxu0 %v6633_v21 }
  0x15   : > { %v6600_v20 = vld [vmem:[%s6707_s20 + $0x78] sm:$0xff]  }
  0x1a   : > { %5850 = vmatmul.mubr.msk.bf16.gmra.mrb[4].mxu0 %vm480_vm2, %v6588_v8 }
  0x1b   : > { %5853 = vmatprep.mubr.msk.bf16.mxu0 %vm480_vm2, %v6589_v9 }
  0x22   : > { %5854 = vmatmul.mubr.msk.bf16.gmra.mrb[8].mxu0 %vm480_vm2, %v6590_v10 }
  0x23   : > { %5857 = vmatprep.mubr.msk.bf16.mxu0 %vm480_vm2, %v6591_v11 }
  0x2a   : > { %5858 = vmatmul.mubr.msk.bf16.gmra.mrb[12].mxu0 %vm480_vm2, %v6592_v12 }
  0x2b   : > { %5861 = vmatprep.mubr.msk.bf16.mxu0 %vm480_vm2, %v6593_v13 }
  0x32   : > { %5862 = vmatmul.mubr.msk.bf16.gmra.mrb[16].mxu0 %vm480_vm2, %v6594_v14 }
  0x33   : > { %5865 = vmatprep.mubr.msk.bf16.mxu0 %vm480_vm2, %v6595_v15 }
  0x3a   : > { %5866 = vmatmul.mubr.msk.bf16.gmra.mrb[20].mxu0 %vm480_vm2, %v6596_v16 }
  0x3b   : > { %5869 = vmatprep.mubr.msk.bf16.mxu0 %vm480_vm2, %v6597_v17 }
  0x42   : > { %5870 = vmatmul.mubr.msk.bf16.gmra.mrb[24].mxu0 %vm480_vm2, %v6598_v18 }
  0x43   : > { %5873 = vmatprep.mubr.msk.bf16.mxu0 %vm480_vm2, %v6599_v19 }
  0x4a   : > { %5874 = vmatmul.mubr.msk.bf16.gmra.mrb[28].mxu0 %vm480_vm2, %v6600_v20 }
  0x4b   : > { %5879 = vmatprep.mubr.msk.bf16.mxu0 %vm6634_vm3, %v6633_v21 }
  0xe5   : > { %v5847_v24 = vpop.f32.mrb[0].mxu0 }
  0xe6   : > { %v570_v25 = vpop.f32.mrb[1].mxu0 }
  0xe7   : > { %v5848_v26 = vpop.f32.mrb[2].mxu0 }
  0xe8   : > { %v573_v27 = vpop.f32.mrb[3].mxu0 }
  0xed   : > { %v5851_v28 = vpop.f32.mrb[4].mxu0 }
  0xee   : > { %v586_v29 = vpop.f32.mrb[5].mxu0 }
  0xef   : > { %v5852_v30 = vpop.f32.mrb[6].mxu0 }
  0xf0   : > { %v589_v31 = vpop.f32.mrb[7].mxu0 }
  0xf5   : > { %v5855_v32 = vpop.f32.mrb[8].mxu0 }
  0xf6   : > { %v699_v33 = vmax.f32 %v5847_v24, %v5855_v32  ;;  %v602_v34 = vpop.f32.mrb[9].mxu0 }
  0xf7   : > { %v697_v35 = vmax.f32 %v570_v25, %v602_v34  ;;  %v5856_v36 = vpop.f32.mrb[10].mxu0 }
  0xf8   : > { %v700_v37 = vmax.f32 %v5848_v26, %v5856_v36  ;;  %v605_v38 = vpop.f32.mrb[11].mxu0 }
  0xf9   : > { %v698_v39 = vmax.f32 %v573_v27, %v605_v38  ;;  %v6770_v38 = vld [vmem:[%s7364_s3 + $0x30] sm:$0xff]  }
  0xfd   : > { %v5859_v40 = vpop.f32.mrb[12].mxu0 }
  0xfe   : > { %v703_v41 = vmax.f32 %v5851_v28, %v5859_v40  ;;  %v618_v42 = vpop.f32.mrb[13].mxu0 }
  0xff   : > { %v701_v43 = vmax.f32 %v586_v29, %v618_v42  ;;  %v5860_v44 = vpop.f32.mrb[14].mxu0  ;;  %v6798_v42 = vld [vmem:[%s7364_s3 + $0x40] sm:$0xff]  }
 0x100   : > { %v704_v45 = vmax.f32 %v5852_v30, %v5860_v44  ;;  %v621_v46 = vpop.f32.mrb[15].mxu0  ;;  %v6826_v44 = vld [vmem:[%s7364_s3 + $0x18] sm:$0xff]  }
 0x101   : > { %v702_v47 = vmax.f32 %v589_v31, %v621_v46  ;;  %v6878_v46 = vld [vmem:[%s7366_s5 + $0x10] sm:$0xff] }
 0x105   : > { %v5863_v48 = vpop.f32.mrb[16].mxu0 }
 0x106   : > { %v634_v49 = vpop.f32.mrb[17].mxu0 }
 0x107   : > { %v5864_v50 = vpop.f32.mrb[18].mxu0 }
 0x108   : > { %v637_v51 = vpop.f32.mrb[19].mxu0 }
 0x10d   : > { %v5867_v52 = vpop.f32.mrb[20].mxu0 }
 0x10e   : > { %v650_v53 = vpop.f32.mrb[21].mxu0 }
 0x10f   : > { %v5868_v54 = vpop.f32.mrb[22].mxu0 }
 0x110   : > { %v653_v55 = vpop.f32.mrb[23].mxu0 }
 0x115   : > { %v5871_v56 = vpop.f32.mrb[24].mxu0 }
 0x116   : > { %v707_v57 = vmax.f32 %v5863_v48, %v5871_v56  ;;  %v666_v58 = vpop.f32.mrb[25].mxu0 }
 0x117   : > { %v705_v60 = vmax.f32 %v634_v49, %v666_v58  ;;  %v5872_v61 = vpop.f32.mrb[26].mxu0  ;;  %v6921_v58 = vld [vmem:[%s7366_s5 + $0x18] sm:$0xff] }
 0x118   : > { %v715_v62 = vmax.f32 %v699_v33, %v707_v57  ;;  %v708_v63 = vmax.f32 %v5864_v50, %v5872_v61  ;;  %v669_v0 = vpop.f32.mrb[27].mxu0 }
 0x119   : > { %v713_v1 = vmax.f32 %v697_v35, %v705_v60  ;;  %v706_v2 = vmax.f32 %v637_v51, %v669_v0  ;;  %v801_v60 = vld [vmem:[%s7366_s5] sm:$0xff] }
 0x11a   : > { %v730_v3 = vadd.f32 %v5437_v59, %v715_v62  ;;  %v716_v4 = vmax.f32 %v700_v37, %v708_v63 }
 0x11b   : > { %v728_v5 = vadd.f32 %v5437_v59, %v713_v1  ;;  %v714_v6 = vmax.f32 %v698_v39, %v706_v2  ;;  %v802_v1 = vld [vmem:[%s7366_s5 + $0x8] sm:$0xff] }
 0x11c   : > { %v731_v7 = vadd.f32 %v5437_v59, %v716_v4  ;;  %v738_v10 = vmax.f32 %v730_v3, 0.0 }
 0x11d   : > { %v729_v8 = vadd.f32 %v5437_v59, %v714_v6  ;;  %v5875_v9 = vpop.f32.mrb[28].mxu0  ;;  %v736_v14 = vmax.f32 %v728_v5, 0.0 }
 0x11e   : > { %v739_v11 = vmax.f32 %v731_v7, 0.0  ;;  %v711_v12 = vmax.f32 %v5867_v52, %v5875_v9  ;;  %v682_v13 = vpop.f32.mrb[29].mxu0 }
 0x11f   : > { %v737_v15 = vmax.f32 %v729_v8, 0.0  ;;  %v709_v16 = vmax.f32 %v650_v53, %v682_v13  ;;  %v5876_v17 = vpop.f32.mrb[30].mxu0 }
 0x120   : > { %v6763_v18 = vpack.c.bf16 %v739_v11, %v738_v10  ;;  %v719_v19 = vmax.f32 %v703_v41, %v711_v12  ;;  %v712_v20 = vmax.f32 %v5868_v54, %v5876_v17  ;;  %v685_v24 = vpop.f32.mrb[31].mxu0  ;;  %v6787_v41 = vld [vmem:[%s7364_s3 + $0x38] sm:$0xff]  }
 0x121   : > { %v6765_v25 = vpack.c.bf16 %v737_v15, %v736_v14  ;;  %v717_v26 = vmax.f32 %v701_v43, %v709_v16  ;;  %v710_v27 = vmax.f32 %v653_v55, %v685_v24  ;;  %v6815_v43 = vld [vmem:[%s7364_s3 + $0x10] sm:$0xff]  }
 0x122   : > { %v734_v28 = vadd.f32 %v5437_v59, %v719_v19  ;;  %v720_v29 = vmax.f32 %v704_v45, %v712_v20  ;;  %v6837_v45 = vld [vmem:[%s7364_s3 + $0x28] sm:$0xff]  }
 0x123   : > { %v732_v30 = vadd.f32 %v5437_v59, %v717_v26  ;;  %v718_v31 = vmax.f32 %v702_v47, %v710_v27  ;;  %v6885_v47 = vld [vmem:[%s7364_s3 + $0x20] sm:$0xff]  }
 0x124   : > { %v735_v32 = vadd.f32 %v5437_v59, %v720_v29  ;;  %v742_v34 = vmax.f32 %v734_v28, 0.0 }
 0x125   : > { %v733_v33 = vadd.f32 %v5437_v59, %v718_v31  ;;  %v740_v36 = vmax.f32 %v732_v30, 0.0 }
 0x126   : > { %v743_v35 = vmax.f32 %v735_v32, 0.0 }
 0x127   : > { %v741_v37 = vmax.f32 %v733_v33, 0.0 }
 0x128   : > { %v6772_v39 = vpack.c.bf16 %v743_v35, %v742_v34 }
 0x129   : > { %v6774_v40 = vpack.c.bf16 %v741_v37, %v740_v36 }
 0x12a   : > { %5880 = vmatmul.mubr.msk.bf16.vlgmr.msra.gmra.mrb[32].mxu0 %vm756_vm4, %v6772_v39 }
 0x12b   : > { %5886 = vmatmul.mubr.msk.bf16.vlgmr.msra.gmra.mrb[0].mxu1 %vm756_vm4, %v6774_v40  ;;  %5956 = vmatpush3.bf16.msra.mxu0 %v6770_v38 }
 0x12c   : > { %5957 = vmatprep.mubr.msk.bf16.mxu0 %vm6634_vm3, %v6633_v21  ;;  %5968 = vmatprep.subr.bf16.mxu0 %v6633_v21 }
 0x12d   : > { %5893 = vmatprep.mubr.msk.f32.mxu1 %vm756_vm4, %v6878_v46 }
 0x132   : > { %5958 = vmatmul.mubr.msk.bf16.vlgmr.msra.gmra.mrb[36].mxu0 %vm756_vm4, %v6772_v39 }
 0x133   : > { %5969 = vmatpush3.bf16.msra.mxu0 %v6787_v41  ;;  %5970 = vmatprep.mubr.msk.bf16.mxu0 %vm6634_vm3, %v6633_v21 }
 0x134   : > { %5981 = vmatprep.subr.bf16.mxu0 %v6633_v21 }
 0x13a   : > { %5971 = vmatmul.mubr.msk.bf16.vlgmr.msra.gmra.mrb[40].mxu0 %vm756_vm4, %v6774_v40 }
 0x13b   : > { %5982 = vmatpush3.bf16.msra.mxu0 %v6798_v42  ;;  %5983 = vmatprep.mubr.msk.bf16.mxu0 %vm6634_vm3, %v6633_v21 }
 0x13c   : > { %6000 = vmatprep.subr.bf16.mxu0 %v6633_v21 }
 0x142   : > { %5984 = vmatmul.mubr.msk.bf16.vlgmr.msra.gmra.mrb[44].mxu0 %vm756_vm4, %v6772_v39 }
 0x143   : > { %6001 = vmatpush3.bf16.msra.mxu0 %v6753_v23  ;;  %6002 = vmatprep.mubr.msk.bf16.mxu0 %vm6634_vm3, %v6633_v21 }
 0x144   : > { %6020 = vmatprep.subr.bf16.mxu0 %v6633_v21 }
 0x14a   : > { %6003 = vmatmul.mubr.msk.bf16.vlgmr.msra.gmra.mrb[48].mxu0 %vm756_vm4, %v6772_v39 }
 0x14b   : > { %6021 = vmatpush3.bf16.msra.mxu0 %v6815_v43  ;;  %6022 = vmatprep.mubr.msk.bf16.mxu0 %vm6634_vm3, %v6633_v21 }
 0x14c   : > { %6033 = vmatprep.subr.bf16.mxu0 %v6633_v21 }
 0x152   : > { %6023 = vmatmul.mubr.msk.bf16.vlgmr.msra.gmra.mrb[52].mxu0 %vm756_vm4, %v6774_v40 }
 0x153   : > { %6034 = vmatpush3.bf16.msra.mxu0 %v6826_v44  ;;  %6035 = vmatprep.mubr.msk.bf16.mxu0 %vm6634_vm3, %v6633_v21 }
 0x154   : > { %6059 = vmatprep.subr.bf16.mxu0 %v6633_v21 }
 0x15a   : > { %6036 = vmatmul.mubr.msk.bf16.vlgmr.msra.gmra.mrb[56].mxu0 %vm756_vm4, %v6765_v25 }
 0x15b   : > { %6060 = vmatpush3.bf16.msra.mxu0 %v6837_v45  ;;  %6061 = vmatprep.mubr.msk.bf16.mxu0 %vm6634_vm3, %v6633_v21 }
 0x15c   : > { %6072 = vmatprep.subr.bf16.mxu0 %v6633_v21 }
 0x162   : > { %6062 = vmatmul.mubr.msk.bf16.vlgmr.msra.gmra.mrb[60].mxu0 %vm756_vm4, %v6765_v25 }
 0x163   : > { %6073 = vmatpush3.bf16.msra.mxu0 %v6770_v38  ;;  %6074 = vmatprep.mubr.msk.bf16.mxu0 %vm6634_vm3, %v6633_v21 }
 0x164   : > { %6085 = vmatprep.subr.bf16.mxu0 %v6633_v21 }
 0x16a   : > { %6075 = vmatmul.mubr.msk.bf16.vlgmr.msra.gmra.mrb[64].mxu0 %vm756_vm4, %v6774_v40 }
 0x16b   : > { %6086 = vmatpush3.bf16.msra.mxu0 %v6787_v41  ;;  %6087 = vmatprep.mubr.msk.bf16.mxu0 %vm6634_vm3, %v6633_v21 }
 0x16c   : > { %6111 = vmatprep.subr.bf16.mxu0 %v6633_v21 }
 0x172   : > { %6088 = vmatmul.mubr.msk.bf16.vlgmr.msra.gmra.mrb[68].mxu0 %vm756_vm4, %v6772_v39 }
 0x173   : > { %6112 = vmatpush3.bf16.msra.mxu0 %v6745_v22  ;;  %6113 = vmatprep.mubr.msk.bf16.mxu0 %vm6634_vm3, %v6633_v21 }
 0x174   : > { %6117 = vmatprep.subr.bf16.mxu0 %v6633_v21 }
 0x17a   : > { %6114 = vmatmul.mubr.msk.bf16.vlgmr.msra.gmra.mrb[72].mxu0 %vm756_vm4, %v6763_v18 }
 0x17b   : > { %6118 = vmatpush3.bf16.msra.mxu0 %v6753_v23  ;;  %6119 = vmatprep.mubr.msk.bf16.mxu0 %vm6634_vm3, %v6633_v21 }
 0x17c   : > { %6137 = vmatprep.subr.bf16.mxu0 %v6633_v21 }
 0x182   : > { %6120 = vmatmul.mubr.msk.bf16.vlgmr.msra.gmra.mrb[76].mxu0 %vm756_vm4, %v6765_v25 }
 0x183   : > { %6138 = vmatpush3.bf16.msra.mxu0 %v6815_v43  ;;  %6139 = vmatprep.mubr.msk.bf16.mxu0 %vm6634_vm3, %v6633_v21 }
 0x184   : > { %6163 = vmatprep.subr.bf16.mxu0 %v6633_v21 }
 0x18a   : > { %6140 = vmatmul.mubr.msk.bf16.vlgmr.msra.gmra.mrb[80].mxu0 %vm756_vm4, %v6763_v18 }
 0x18b   : > { %6164 = vmatpush3.bf16.msra.mxu0 %v6885_v47  ;;  %6165 = vmatprep.mubr.msk.bf16.mxu0 %vm6634_vm3, %v6633_v21 }
 0x18c   : > { %6176 = vmatprep.subr.bf16.mxu0 %v6633_v21 }
 0x192   : > { %6166 = vmatmul.mubr.msk.bf16.vlgmr.msra.gmra.mrb[84].mxu0 %vm756_vm4, %v6774_v40 }
 0x193   : > { %6177 = vmatpush3.bf16.msra.mxu0 %v6837_v45  ;;  %6178 = vmatprep.mubr.msk.bf16.mxu0 %vm6634_vm3, %v6633_v21 }
 0x194   : > { %6189 = vmatprep.subr.bf16.mxu0 %v6633_v21 }
 0x19a   : > { %6179 = vmatmul.mubr.msk.bf16.vlgmr.msra.gmra.mrb[88].mxu0 %vm756_vm4, %v6772_v39 }
 0x19b   : > { %6190 = vmatpush3.bf16.msra.mxu0 %v6770_v38  ;;  %6191 = vmatprep.mubr.msk.bf16.mxu0 %vm6634_vm3, %v6633_v21 }
 0x19c   : > { %6215 = vmatprep.subr.bf16.mxu0 %v6633_v21 }
 0x1a2   : > { %6192 = vmatmul.mubr.msk.bf16.vlgmr.msra.gmra.mrb[92].mxu0 %vm756_vm4, %v6763_v18 }
 0x1a3   : > { %6216 = vmatpush3.bf16.msra.mxu0 %v6798_v42  ;;  %6217 = vmatprep.mubr.msk.bf16.mxu0 %vm6634_vm3, %v6633_v21 }
 0x1a4   : > { %6228 = vmatprep.subr.bf16.mxu0 %v6633_v21 }
 0x1aa   : > { %6218 = vmatmul.mubr.msk.bf16.vlgmr.msra.gmra.mrb[96].mxu0 %vm756_vm4, %v6763_v18 }
 0x1ab   : > { %6229 = vmatpush3.bf16.msra.mxu0 %v6745_v22  ;;  %6230 = vmatprep.mubr.msk.bf16.mxu0 %vm6634_vm3, %v6633_v21 }
 0x1b2   : > { %6231 = vmatmul.mubr.msk.bf16.vlgmr.msra.gmra.mrb[100].mxu0 %vm756_vm4, %v6765_v25 }
 0x1fd   : > { %v794_v48 = vpop.f32.mrb[32].mxu0 }
 0x1fe   : > { %v5881_v49 = vpop.f32.mrb[33].mxu0  ;;  %v849_v50 = vpop.f32.mrb[0].mxu1 }
 0x1ff   : > { %v797_v51 = vpop.f32.mrb[34].mxu0  ;;  %v5887_v52 = vpop.f32.mrb[1].mxu1 }
 0x200   : > { %v6369_v53 = vpack.c.bf16 %v797_v51, %v794_v48  ;;  %v5882_v54 = vpop.f32.mrb[35].mxu0  ;;  %v852_v55 = vpop.f32.mrb[2].mxu1 }
 0x201   : > { %v6365_v56 = vpack.c.bf16 %v852_v55, %v849_v50  ;;  %v5888_v57 = vpop.f32.mrb[3].mxu1 }
 0x203   : > { %6366 = vmatprep.subr.bf16.mxu1 %v6365_v56 }
 0x204   : > { %6368 = vmatpush3.bf16.msra.mxu1 %v6365_v56 }
 0x205   : > { %6370 = vmatprep.subr.bf16.mxu1 %v6369_v53  ;;  %v1596_v59 = vpop.f32.mrb[36].mxu0 }
 0x206   : > { %v5959_v61 = vpop.f32.mrb[37].mxu0 }
 0x207   : > { %5894 = vmatmul.mubr.msk.f32.vlgmr.msra.gmra.mrb[4].mxu1 %vm756_vm4, %v6921_v58  ;;  %v1599_v62 = vpop.f32.mrb[38].mxu0 }
 0x208   : > { %v6928_v63 = vpack.c.bf16 %v1599_v62, %v1596_v59  ;;  %6372 = vmatpush3.bf16.msra.mxu1 %v6369_v53  ;;  %v5960_v0 = vpop.f32.mrb[39].mxu0  ;;  %5900 = vmatprep.mubr.msk.f32.mxu1 %vm756_vm4, %v801_v60 }
 0x209   : > { %5903 = vmatprep.subr.bf16.mxu1 %v6633_v21 }
 0x20d   : > { %v1723_v2 = vpop.f32.mrb[40].mxu0 }
 0x20e   : > { %v5972_v3 = vpop.f32.mrb[41].mxu0 }
 0x20f   : > { %5901 = vmatmul.mubr.msk.f32.vlgmr.msra.gmra.mrb[4].mxu1 %vm756_vm4, %v802_v1  ;;  %v1726_v4 = vpop.f32.mrb[42].mxu0 }
 0x210   : > { %v6936_v5 = vpack.c.bf16 %v1726_v4, %v1723_v2  ;;  %5904 = vmatpush3.bf16.msra.mxu1 %v6815_v43  ;;  %v5973_v6 = vpop.f32.mrb[43].mxu0  ;;  %5905 = vmatprep.mubr.msk.bf16.mxu1 %vm6634_vm3, %v6633_v21 }
 0x213   : > { %5906 = vmatmul.mubr.msk.bf16.vlgmr.msra.gmra.mrb[8].mxu1 %vm756_vm4, %v6772_v39 }
 0x214   : > { %5913 = vmatprep.mubr.msk.f32.mxu1 %vm756_vm4, %v6878_v46 }
 0x215   : > { %v1850_v7 = vpop.f32.mrb[44].mxu0 }
 0x216   : > { %v5985_v8 = vpop.f32.mrb[45].mxu0 }
 0x217   : > { %v1853_v9 = vpop.f32.mrb[46].mxu0 }
 0x218   : > { %v6945_v10 = vpack.c.bf16 %v1853_v9, %v1850_v7  ;;  %v5986_v11 = vpop.f32.mrb[47].mxu0 }
 0x21d   : > { %v2009_v12 = vpop.f32.mrb[48].mxu0 }
 0x21e   : > { %v6004_v13 = vpop.f32.mrb[49].mxu0 }
 0x21f   : > { %v2012_v14 = vpop.f32.mrb[50].mxu0 }
 0x220   : > { %v6947_v15 = vpack.c.bf16 %v2012_v14, %v2009_v12  ;;  %v6005_v16 = vpop.f32.mrb[51].mxu0 }
 0x225   : > { %v2200_v17 = vpop.f32.mrb[52].mxu0 }
 0x226   : > { %v6024_v19 = vpop.f32.mrb[53].mxu0 }
 0x227   : > { %v2203_v20 = vpop.f32.mrb[54].mxu0 }
 0x228   : > { %v6949_v24 = vpack.c.bf16 %v2203_v20, %v2200_v17  ;;  %v6025_v26 = vpop.f32.mrb[55].mxu0 }
 0x22d   : > { %v2327_v27 = vpop.f32.mrb[56].mxu0 }
 0x22e   : > { %v6037_v28 = vpop.f32.mrb[57].mxu0 }
 0x22f   : > { %v2330_v29 = vpop.f32.mrb[58].mxu0 }
 0x230   : > { %v6951_v30 = vpack.c.bf16 %v2330_v29, %v2327_v27  ;;  %v6038_v31 = vpop.f32.mrb[59].mxu0 }
 0x235   : > { %v2563_v32 = vpop.f32.mrb[60].mxu0 }
 0x236   : > { %v6063_v33 = vpop.f32.mrb[61].mxu0 }
 0x237   : > { %v2566_v34 = vpop.f32.mrb[62].mxu0 }
 0x238   : > { %v6953_v35 = vpack.c.bf16 %v2566_v34, %v2563_v32  ;;  %v6064_v36 = vpop.f32.mrb[63].mxu0 }
 0x23d   : > { %v2690_v37 = vpop.f32.mrb[64].mxu0 }
 0x23e   : > { %v6076_v48 = vpop.f32.mrb[65].mxu0 }
 0x23f   : > { %v2693_v49 = vpop.f32.mrb[66].mxu0 }
 0x240   : > { %v6955_v50 = vpack.c.bf16 %v2693_v49, %v2690_v37  ;;  %v6077_v51 = vpop.f32.mrb[67].mxu0 }
 0x245   : > { %v2808_v52 = vpop.f32.mrb[68].mxu0 }
 0x246   : > { %v6089_v53 = vpop.f32.mrb[69].mxu0 }
 0x247   : > { %v2811_v54 = vpop.f32.mrb[70].mxu0 }
 0x248   : > { %v6957_v55 = vpack.c.bf16 %v2811_v54, %v2808_v52  ;;  %v6090_v56 = vpop.f32.mrb[71].mxu0 }
 0x24d   : > { %v3046_v57 = vpop.f32.mrb[72].mxu0 }
 0x24e   : > { %v6115_v59 = vpop.f32.mrb[73].mxu0 }
 0x24f   : > { %v3049_v60 = vpop.f32.mrb[74].mxu0 }
 0x250   : > { %v6959_v61 = vpack.c.bf16 %v3049_v60, %v3046_v57  ;;  %v6116_v62 = vpop.f32.mrb[75].mxu0 }
 0x255   : > { %v3087_v0 = vpop.f32.mrb[76].mxu0 }
 0x256   : > { %v6121_v1 = vpop.f32.mrb[77].mxu0 }
 0x257   : > { %v3090_v2 = vpop.f32.mrb[78].mxu0 }
 0x258   : > { %v6961_v3 = vpack.c.bf16 %v3090_v2, %v3087_v0  ;;  %v6122_v4 = vpop.f32.mrb[79].mxu0  ;;  %v6986_v2 = vld [vmem:[%s7366_s5 + $0x30] sm:$0xff] }
 0x25d   : > { %v3278_v6 = vpop.f32.mrb[80].mxu0 }
 0x25e   : > { %v6141_v7 = vpop.f32.mrb[81].mxu0 }
 0x25f   : > { %v3281_v8 = vpop.f32.mrb[82].mxu0 }
 0x260   : > { %v6963_v9 = vpack.c.bf16 %v3281_v8, %v3278_v6  ;;  %v6142_v11 = vpop.f32.mrb[83].mxu0 }
 0x265   : > { %v3514_v12 = vpop.f32.mrb[84].mxu0 }
 0x266   : > { %v6167_v13 = vpop.f32.mrb[85].mxu0 }
 0x267   : > { %v3517_v14 = vpop.f32.mrb[86].mxu0  ;;  %v7006_v13 = vld [vmem:[%s7366_s5 + $0x40] sm:$0xff] }
 0x268   : > { %v6965_v16 = vpack.c.bf16 %v3517_v14, %v3514_v12  ;;  %v6168_v17 = vpop.f32.mrb[87].mxu0  ;;  %v6993_v12 = vld [vmem:[%s7366_s5 + $0x38] sm:$0xff]  ;;  %6244 = vmatprep.mubr.msk.f32.mxu0 %vm756_vm4, %v7006_v13 }
 0x26d   : > { %v3632_v19 = vpop.f32.mrb[88].mxu0 }
 0x26e   : > { %v6180_v20 = vpop.f32.mrb[89].mxu0 }
 0x26f   : > { %v3635_v26 = vpop.f32.mrb[90].mxu0 }
 0x270   : > { %v6967_v27 = vpack.c.bf16 %v3635_v26, %v3632_v19  ;;  %v6181_v28 = vpop.f32.mrb[91].mxu0 }
 0x271   : > { %v7015_v28 = vld [vmem:[%s7366_s5 + $0x48] sm:$0xff] }
 0x275   : > { %v3750_v29 = vpop.f32.mrb[92].mxu0 }
 0x276   : > { %v6193_v31 = vpop.f32.mrb[93].mxu0 }
 0x277   : > { %v3753_v32 = vpop.f32.mrb[94].mxu0 }
 0x278   : > { %v6969_v33 = vpack.c.bf16 %v3753_v32, %v3750_v29  ;;  %v6194_v34 = vpop.f32.mrb[95].mxu0 }
 0x27d   : > { %v4004_v36 = vpop.f32.mrb[96].mxu0 }
 0x27e   : > { %v6219_v37 = vpop.f32.mrb[97].mxu0 }
 0x27f   : > { %v4007_v48 = vpop.f32.mrb[98].mxu0 }
 0x280   : > { %v6971_v49 = vpack.c.bf16 %v4007_v48, %v4004_v36  ;;  %v6220_v51 = vpop.f32.mrb[99].mxu0 }
 0x285   : > { %v4124_v52 = vpop.f32.mrb[100].mxu0 }
 0x286   : > { %v6232_v53 = vpop.f32.mrb[101].mxu0 }
 0x287   : > { %v4127_v54 = vpop.f32.mrb[102].mxu0 }
 0x288   : > { %v6973_v56 = vpack.c.bf16 %v4127_v54, %v4124_v52  ;;  %v6233_v57 = vpop.f32.mrb[103].mxu0  ;;  %v7095_v54 = vld [vmem:[%s7366_s5 + $0x50] sm:$0xff] }
 0x289   : > { %v7106_v57 = vld [vmem:[%s7366_s5 + $0x58] sm:$0xff] }
 0x2e6   : > { %v1064_v59 = vpop.f32.mrb[8].mxu1 }
 0x2e7   : > { %v5907_v60 = vpop.f32.mrb[9].mxu1 }
 0x2e8   : > { %v1067_v62 = vpop.f32.mrb[10].mxu1 }
 0x2e9   : > { %v6373_v0 = vpack.c.bf16 %v1067_v62, %v1064_v59  ;;  %v5908_v1 = vpop.f32.mrb[11].mxu1 }
 0x2eb   : > { %6374 = vmatprep.subr.bf16.mxu1 %v6373_v0 }
 0x2ec   : > { %6376 = vmatpush3.bf16.msra.mxu1 %v6373_v0 }
 0x2ed   : > { %5916 = vmatprep.subr.bf16.mxu1 %v6633_v21 }
 0x2ef   : > { %5914 = vmatmul.mubr.msk.f32.vlgmr.msra.gmra.mrb[4].mxu1 %vm756_vm4, %v6921_v58 }
 0x2f0   : > { %5917 = vmatpush3.bf16.msra.mxu1 %v6826_v44  ;;  %5918 = vmatprep.mubr.msk.bf16.mxu1 %vm6634_vm3, %v6633_v21 }
 0x2f3   : > { %5919 = vmatmul.mubr.msk.bf16.vlgmr.msra.gmra.mrb[12].mxu1 %vm756_vm4, %v6763_v18 }
 0x2f4   : > { %5926 = vmatprep.mubr.msk.f32.mxu1 %vm756_vm4, %v6986_v2 }
 0x3c6   : > { %v1194_v4 = vpop.f32.mrb[12].mxu1 }
 0x3c7   : > { %v5920_v6 = vpop.f32.mrb[13].mxu1 }
 0x3c8   : > { %v1197_v7 = vpop.f32.mrb[14].mxu1 }
 0x3c9   : > { %v6377_v8 = vpack.c.bf16 %v1197_v7, %v1194_v4  ;;  %v5921_v11 = vpop.f32.mrb[15].mxu1 }
 0x3cb   : > { %6378 = vmatprep.subr.bf16.mxu1 %v6377_v8 }
 0x3cc   : > { %6380 = vmatpush3.bf16.msra.mxu1 %v6377_v8 }
 0x3cd   : > { %5929 = vmatprep.subr.bf16.mxu1 %v6633_v21 }
 0x3cf   : > { %5927 = vmatmul.mubr.msk.f32.vlgmr.msra.gmra.mrb[4].mxu1 %vm756_vm4, %v6993_v12 }
 0x3d0   : > { %5930 = vmatpush3.bf16.msra.mxu1 %v6885_v47  ;;  %5931 = vmatprep.mubr.msk.bf16.mxu1 %vm6634_vm3, %v6633_v21 }
 0x3d3   : > { %5932 = vmatmul.mubr.msk.bf16.vlgmr.msra.gmra.mrb[16].mxu1 %vm756_vm4, %v6765_v25 }
 0x3d4   : > { %5939 = vmatprep.mubr.msk.f32.mxu1 %vm756_vm4, %v7006_v13 }
 0x4a6   : > { %v1333_v14 = vpop.f32.mrb[16].mxu1 }
 0x4a7   : > { %v5933_v17 = vpop.f32.mrb[17].mxu1 }
 0x4a8   : > { %v1336_v19 = vpop.f32.mrb[18].mxu1  ;;  %v7205_v17 = vld [vmem:[%s7366_s5 + $0x78] sm:$0xff] }
 0x4a9   : > { %v6381_v20 = vpack.c.bf16 %v1336_v19, %v1333_v14  ;;  %v5934_v26 = vpop.f32.mrb[19].mxu1 }
 0x4ab   : > { %6382 = vmatprep.subr.bf16.mxu1 %v6381_v20 }
 0x4ac   : > { %6384 = vmatpush3.bf16.msra.mxu1 %v6381_v20 }
 0x4ad   : > { %5942 = vmatprep.subr.bf16.mxu1 %v6633_v21 }
 0x4af   : > { %5940 = vmatmul.mubr.msk.f32.vlgmr.msra.gmra.mrb[4].mxu1 %vm756_vm4, %v7015_v28 }
 0x4b0   : > { %5943 = vmatpush3.bf16.msra.mxu1 %v6837_v45  ;;  %5944 = vmatprep.mubr.msk.bf16.mxu1 %vm6634_vm3, %v6633_v21 }
 0x4b3   : > { %5945 = vmatmul.mubr.msk.bf16.vlgmr.msra.gmra.mrb[20].mxu1 %vm756_vm4, %v6763_v18 }
 0x4b4   : > { %5952 = vmatprep.mubr.msk.f32.mxu1 %vm756_vm4, %v7006_v13 }
 0x586   : > { %v1469_v29 = vpop.f32.mrb[20].mxu1 }
 0x587   : > { %v5946_v31 = vpop.f32.mrb[21].mxu1 }
 0x588   : > { %v1472_v32 = vpop.f32.mrb[22].mxu1 }
 0x589   : > { %v6385_v34 = vpack.c.bf16 %v1472_v32, %v1469_v29  ;;  %v5947_v36 = vpop.f32.mrb[23].mxu1 }
 0x58b   : > { %6386 = vmatprep.subr.bf16.mxu1 %v6385_v34 }
 0x58c   : > { %6388 = vmatpush3.bf16.msra.mxu1 %v6385_v34 }
 0x58d   : > { %6390 = vmatprep.subr.bf16.mxu1 %v6928_v63 }
 0x58f   : > { %5953 = vmatmul.mubr.msk.f32.vlgmr.msra.gmra.mrb[4].mxu1 %vm756_vm4, %v7015_v28 }
 0x590   : > { %6392 = vmatpush3.bf16.msra.mxu1 %v6928_v63  ;;  %5965 = vmatprep.mubr.msk.f32.mxu1 %vm756_vm4, %v6986_v2 }
 0x591   : > { %6394 = vmatprep.subr.bf16.mxu1 %v6936_v5 }
 0x597   : > { %5966 = vmatmul.mubr.msk.f32.vlgmr.msra.gmra.mrb[4].mxu1 %vm756_vm4, %v6993_v12 }
 0x598   : > { %6396 = vmatpush3.bf16.msra.mxu1 %v6936_v5  ;;  %5978 = vmatprep.mubr.msk.f32.mxu1 %vm756_vm4, %v7006_v13 }
 0x599   : > { %6398 = vmatprep.subr.bf16.mxu1 %v6945_v10 }
 0x59f   : > { %5979 = vmatmul.mubr.msk.f32.vlgmr.msra.gmra.mrb[4].mxu1 %vm756_vm4, %v7015_v28 }
 0x5a0   : > { %6400 = vmatpush3.bf16.msra.mxu1 %v6945_v10  ;;  %5991 = vmatprep.mubr.msk.f32.mxu1 %vm756_vm4, %v7006_v13 }
 0x5a1   : > { %5994 = vmatprep.subr.bf16.mxu1 %v6633_v21 }
 0x5a7   : > { %5992 = vmatmul.mubr.msk.f32.vlgmr.msra.gmra.mrb[4].mxu1 %vm756_vm4, %v7015_v28 }
 0x5a8   : > { %5995 = vmatpush3.bf16.msra.mxu1 %v6745_v22  ;;  %5996 = vmatprep.mubr.msk.bf16.mxu1 %vm6634_vm3, %v6633_v21 }
 0x5a9   : > { %6402 = vmatprep.subr.bf16.mxu1 %v6947_v15 }
 0x5ab   : > { %5997 = vmatmul.mubr.msk.bf16.vlgmr.msra.gmra.mrb[24].mxu1 %vm756_vm4, %v6774_v40 }
 0x5ac   : > { %6404 = vmatpush3.bf16.msra.mxu1 %v6947_v15  ;;  %6010 = vmatprep.mubr.msk.f32.mxu1 %vm756_vm4, %v6878_v46  ;;  %v5503_v15 = vld [vmem:[%s7366_s5 + $0x20] sm:$0xff] }
 0x5b3   : > { %6011 = vmatmul.mubr.msk.f32.vlgmr.msra.gmra.mrb[6].mxu1 %vm756_vm4, %v6921_v58 }
 0x5b4   : > { %6017 = vmatprep.mubr.msk.f32.mxu1 %vm756_vm4, %v6878_v46  ;;  %v5504_v46 = vld [vmem:[%s7366_s5 + $0x28] sm:$0xff] }
 0x67a   : > { %v7061_v22 = vpop.f32.mrb[4].mxu1 }
 0x67b   : > { %v7063_v63 = vpop.f32.mrb[5].mxu1 }
 0x67e   : > { %v1968_v5 = vpop.f32.mrb[24].mxu1 }
 0x67f   : > { %v5998_v10 = vpop.f32.mrb[25].mxu1 }
 0x680   : > { %v1971_v37 = vpop.f32.mrb[26].mxu1 }
 0x681   : > { %v6405_v48 = vpack.c.bf16 %v1971_v37, %v1968_v5  ;;  %v5999_v51 = vpop.f32.mrb[27].mxu1 }
 0x683   : > { %6406 = vmatprep.subr.bf16.mxu1 %v6405_v48 }
 0x684   : > { %6408 = vmatpush3.bf16.msra.mxu1 %v6405_v48 }
 0x685   : > { %6410 = vmatprep.subr.bf16.mxu1 %v6949_v24 }
 0x687   : > { %6018 = vmatmul.mubr.msk.f32.vlgmr.msra.gmra.mrb[6].mxu1 %vm756_vm4, %v6921_v58 }
 0x688   : > { %6412 = vmatpush3.bf16.msra.mxu1 %v6949_v24  ;;  %6030 = vmatprep.mubr.msk.f32.mxu1 %vm756_vm4, %v5503_v15 }
 0x689   : > { %6414 = vmatprep.subr.bf16.mxu1 %v6951_v30 }
 0x68f   : > { %6031 = vmatmul.mubr.msk.f32.vlgmr.msra.gmra.mrb[6].mxu1 %vm756_vm4, %v5504_v46 }
 0x690   : > { %6416 = vmatpush3.bf16.msra.mxu1 %v6951_v30  ;;  %6043 = vmatprep.mubr.msk.f32.mxu1 %vm756_vm4, %v7006_v13 }
 0x691   : > { %6046 = vmatprep.subr.bf16.mxu1 %v6633_v21 }
 0x697   : > { %6044 = vmatmul.mubr.msk.f32.vlgmr.msra.gmra.mrb[6].mxu1 %vm756_vm4, %v7015_v28 }
 0x698   : > { %6047 = vmatpush3.bf16.msra.mxu1 %v6885_v47  ;;  %6048 = vmatprep.mubr.msk.bf16.mxu1 %vm6634_vm3, %v6633_v21 }
 0x69b   : > { %6049 = vmatmul.mubr.msk.bf16.vlgmr.msra.gmra.mrb[28].mxu1 %vm756_vm4, %v6763_v18 }
 0x69c   : > { %6056 = vmatprep.mubr.msk.f32.mxu1 %vm756_vm4, %v7006_v13 }
 0x76e   : > { %v2445_v58 = vpop.f32.mrb[28].mxu1 }
 0x76f   : > { %v6050_v24 = vpop.f32.mrb[29].mxu1 }
 0x770   : > { %v2448_v30 = vpop.f32.mrb[30].mxu1 }
 0x771   : > { %v6417_v52 = vpack.c.bf16 %v2448_v30, %v2445_v58  ;;  %v6051_v53 = vpop.f32.mrb[31].mxu1 }
 0x773   : > { %6418 = vmatprep.subr.bf16.mxu1 %v6417_v52 }
 0x774   : > { %6420 = vmatpush3.bf16.msra.mxu1 %v6417_v52 }
 0x775   : > { %6422 = vmatprep.subr.bf16.mxu1 %v6953_v35 }
 0x777   : > { %6057 = vmatmul.mubr.msk.f32.vlgmr.msra.gmra.mrb[6].mxu1 %vm756_vm4, %v7015_v28 }
 0x778   : > { %6424 = vmatpush3.bf16.msra.mxu1 %v6953_v35  ;;  %6069 = vmatprep.mubr.msk.f32.mxu1 %vm756_vm4, %v7095_v54 }
 0x779   : > { %6426 = vmatprep.subr.bf16.mxu1 %v6955_v50 }
 0x77f   : > { %6070 = vmatmul.mubr.msk.f32.vlgmr.msra.gmra.mrb[6].mxu1 %vm756_vm4, %v7106_v57 }
 0x780   : > { %6428 = vmatpush3.bf16.msra.mxu1 %v6955_v50  ;;  %6082 = vmatprep.mubr.msk.f32.mxu1 %vm756_vm4, %v7006_v13 }
 0x781   : > { %6430 = vmatprep.subr.bf16.mxu1 %v6957_v55 }
 0x787   : > { %6083 = vmatmul.mubr.msk.f32.vlgmr.msra.gmra.mrb[6].mxu1 %vm756_vm4, %v7015_v28 }
 0x788   : > { %6432 = vmatpush3.bf16.msra.mxu1 %v6957_v55  ;;  %6095 = vmatprep.mubr.msk.f32.mxu1 %vm756_vm4, %v7006_v13 }
 0x789   : > { %6098 = vmatprep.subr.bf16.mxu1 %v6633_v21 }
 0x78f   : > { %6096 = vmatmul.mubr.msk.f32.vlgmr.msra.gmra.mrb[6].mxu1 %vm756_vm4, %v7015_v28 }
 0x790   : > { %6099 = vmatpush3.bf16.msra.mxu1 %v6798_v42  ;;  %6100 = vmatprep.mubr.msk.bf16.mxu1 %vm6634_vm3, %v6633_v21 }
 0x793   : > { %6101 = vmatmul.mubr.msk.bf16.vlgmr.msra.gmra.mrb[32].mxu1 %vm756_vm4, %v6774_v40 }
 0x794   : > { %6108 = vmatprep.mubr.msk.f32.mxu1 %vm756_vm4, %v7095_v54 }
 0x866   : > { %v2926_v35 = vpop.f32.mrb[32].mxu1 }
 0x867   : > { %v6102_v50 = vpop.f32.mrb[33].mxu1 }
 0x868   : > { %v2929_v55 = vpop.f32.mrb[34].mxu1 }
 0x869   : > { %v6433_v59 = vpack.c.bf16 %v2929_v55, %v2926_v35  ;;  %v6103_v60 = vpop.f32.mrb[35].mxu1 }
 0x86b   : > { %6434 = vmatprep.subr.bf16.mxu1 %v6433_v59 }
 0x86c   : > { %6436 = vmatpush3.bf16.msra.mxu1 %v6433_v59 }
 0x86d   : > { %6438 = vmatprep.subr.bf16.mxu1 %v6961_v3 }
 0x86f   : > { %6109 = vmatmul.mubr.msk.f32.vlgmr.msra.gmra.mrb[6].mxu1 %vm756_vm4, %v7106_v57 }
 0x870   : > { %6440 = vmatpush3.bf16.msra.mxu1 %v6961_v3  ;;  %6127 = vmatprep.mubr.msk.f32.mxu1 %vm756_vm4, %v7006_v13 }
 0x871   : > { %6442 = vmatprep.subr.bf16.mxu1 %v6959_v61 }
 0x873   : > { %6128 = vmatmul.mubr.msk.f32.vlgmr.msra.gmra.mrb[36].mxu1 %vm756_vm4, %v7015_v28 }
 0x874   : > { %6444 = vmatpush3.bf16.msra.mxu1 %v6959_v61  ;;  %6134 = vmatprep.mubr.msk.f32.mxu1 %vm756_vm4, %v6986_v2 }
 0x875   : > { %6446 = vmatprep.subr.bf16.mxu1 %v6963_v9 }
 0x87b   : > { %6135 = vmatmul.mubr.msk.f32.vlgmr.msra.gmra.mrb[36].mxu1 %vm756_vm4, %v6993_v12 }
 0x87c   : > { %6448 = vmatpush3.bf16.msra.mxu1 %v6963_v9  ;;  %6147 = vmatprep.mubr.msk.f32.mxu1 %vm756_vm4, %v7006_v13 }
 0x87d   : > { %6150 = vmatprep.subr.bf16.mxu1 %v6633_v21 }
 0x883   : > { %6148 = vmatmul.mubr.msk.f32.vlgmr.msra.gmra.mrb[36].mxu1 %vm756_vm4, %v7015_v28 }
 0x884   : > { %6151 = vmatpush3.bf16.msra.mxu1 %v6826_v44  ;;  %6152 = vmatprep.mubr.msk.bf16.mxu1 %vm6634_vm3, %v6633_v21 }
 0x887   : > { %6153 = vmatmul.mubr.msk.bf16.vlgmr.msra.gmra.mrb[40].mxu1 %vm756_vm4, %v6772_v39 }
 0x888   : > { %6160 = vmatprep.mubr.msk.f32.mxu1 %vm756_vm4, %v6986_v2  ;;  %v5546_v2 = vld [vmem:[%s7366_s5 + $0x60] sm:$0xff] }
 0x942   : > { %v7157_v61 = vpop.f32.mrb[6].mxu1 }
 0x943   : > { %v3011_v3 = vmax.f32 %v7061_v22, %v7157_v61  ;;  %v7161_v9 = vpop.f32.mrb[7].mxu1 }
 0x944   : > { %v3010_v62 = vmax.f32 %v7063_v63, %v7161_v9  ;;  %v6611_v9 = vld [vmem:[%s7367_s6 + $0x8] sm:$0xff]  }
 0x95a   : > { %v3396_v0 = vpop.f32.mrb[40].mxu1 }
 0x95b   : > { %v6154_v1 = vpop.f32.mrb[41].mxu1 }
 0x95c   : > { %v3399_v4 = vpop.f32.mrb[42].mxu1 }
 0x95d   : > { %v6449_v6 = vpack.c.bf16 %v3399_v4, %v3396_v0  ;;  %v6155_v7 = vpop.f32.mrb[43].mxu1  ;;  %v5587_v0 = vld [vmem:[%s7365_s4] ss:$0 sm:$0xff] }
 0x95f   : > { %6450 = vmatprep.subr.bf16.mxu1 %v6449_v6 }
 0x960   : > { %6452 = vmatpush3.bf16.msra.mxu1 %v6449_v6 }
 0x961   : > { %6454 = vmatprep.subr.bf16.mxu1 %v6965_v16 }
 0x963   : > { %6161 = vmatmul.mubr.msk.f32.vlgmr.msra.gmra.mrb[36].mxu1 %vm756_vm4, %v6993_v12 }
 0x964   : > { %6456 = vmatpush3.bf16.msra.mxu1 %v6965_v16  ;;  %6173 = vmatprep.mubr.msk.f32.mxu1 %vm756_vm4, %v7006_v13  ;;  %v5547_v16 = vld [vmem:[%s7366_s5 + $0x68] sm:$0xff] }
 0x965   : > { %6458 = vmatprep.subr.bf16.mxu1 %v6967_v27 }
 0x96b   : > { %6174 = vmatmul.mubr.msk.f32.vlgmr.msra.gmra.mrb[36].mxu1 %vm756_vm4, %v7015_v28 }
 0x96c   : > { %6460 = vmatpush3.bf16.msra.mxu1 %v6967_v27  ;;  %6186 = vmatprep.mubr.msk.f32.mxu1 %vm756_vm4, %v7006_v13  ;;  %v7198_v27 = vld [vmem:[%s7366_s5 + $0x70] sm:$0xff] }
 0x96d   : > { %6462 = vmatprep.subr.bf16.mxu1 %v6969_v33 }
 0x973   : > { %6187 = vmatmul.mubr.msk.f32.vlgmr.msra.gmra.mrb[36].mxu1 %vm756_vm4, %v7015_v28 }
 0x974   : > { %6464 = vmatpush3.bf16.msra.mxu1 %v6969_v33  ;;  %6199 = vmatprep.mubr.msk.f32.mxu1 %vm756_vm4, %v5546_v2 }
 0x975   : > { %6202 = vmatprep.subr.bf16.mxu1 %v6633_v21 }
 0x97b   : > { %6200 = vmatmul.mubr.msk.f32.vlgmr.msra.gmra.mrb[36].mxu1 %vm756_vm4, %v5547_v16 }
 0x97c   : > { %6203 = vmatpush3.bf16.msra.mxu1 %v6787_v41  ;;  %6204 = vmatprep.mubr.msk.bf16.mxu1 %vm6634_vm3, %v6633_v21 }
 0x97f   : > { %6205 = vmatmul.mubr.msk.bf16.vlgmr.msra.gmra.mrb[44].mxu1 %vm756_vm4, %v6765_v25 }
 0x980   : > { %6212 = vmatprep.mubr.msk.f32.mxu1 %vm756_vm4, %v7198_v27 }
 0xa52   : > { %v3877_v33 = vpop.f32.mrb[44].mxu1 }
 0xa53   : > { %v6206_v8 = vpop.f32.mrb[45].mxu1 }
 0xa54   : > { %v3880_v11 = vpop.f32.mrb[46].mxu1 }
 0xa55   : > { %v6465_v12 = vpack.c.bf16 %v3880_v11, %v3877_v33  ;;  %v6207_v14 = vpop.f32.mrb[47].mxu1  ;;  %v6612_v33 = vld [vmem:[%s7369_s8] sm:$0xff]   ;;  %v6613_v11 = vld [vmem:[%s7369_s8 + $0x8] sm:$0xff]  }
 0xa56   : > { %v6615_v14 = vld [vmem:[%s7369_s8 + $0x18] sm:$0xff]  }
 0xa57   : > { %6466 = vmatprep.subr.bf16.mxu1 %v6465_v12 }
 0xa58   : > { %6468 = vmatpush3.bf16.msra.mxu1 %v6465_v12  ;;  %v6614_v12 = vld [vmem:[%s7369_s8 + $0x10] sm:$0xff]  }
 0xa59   : > { %6470 = vmatprep.subr.bf16.mxu1 %v6971_v49 }
 0xa5b   : > { %6213 = vmatmul.mubr.msk.f32.vlgmr.msra.gmra.mrb[36].mxu1 %vm756_vm4, %v7205_v17 }
 0xa5c   : > { %6472 = vmatpush3.bf16.msra.mxu1 %v6971_v49  ;;  %6225 = vmatprep.mubr.msk.f32.mxu1 %vm756_vm4, %v7198_v27 }
 0xa5d   : > { %6234 = vmatprep.subr.bf16.mxu1 %v6633_v21 }
 0xa63   : > { %6226 = vmatmul.mubr.msk.f32.vlgmr.msra.gmra.mrb[36].mxu1 %vm756_vm4, %v7205_v17 }
 0xa64   : > { %6235 = vmatpush3.bf16.msra.mxu1 %v6753_v23  ;;  %6236 = vmatprep.mubr.msk.bf16.mxu1 %vm6634_vm3, %v6633_v21 }
 0xa65   : > { %6254 = vmatprep.subr.bf16.mxu1 %v6633_v21 }
 0xa67   : > { %6237 = vmatmul.mubr.msk.bf16.vlgmr.msra.gmra.mrb[48].mxu1 %vm756_vm4, %v6763_v18 }
 0xa68   : > { %6255 = vmatpush3.bf16.msra.mxu1 %v6815_v43  ;;  %6256 = vmatprep.mubr.msk.bf16.mxu1 %vm6634_vm3, %v6633_v21 }
 0xa69   : > { %6280 = vmatprep.subr.bf16.mxu1 %v6633_v21 }
 0xa6f   : > { %6257 = vmatmul.mubr.msk.bf16.vlgmr.msra.gmra.mrb[52].mxu1 %vm756_vm4, %v6765_v25 }
 0xa70   : > { %6281 = vmatpush3.bf16.msra.mxu1 %v6885_v47  ;;  %6282 = vmatprep.mubr.msk.bf16.mxu1 %vm6634_vm3, %v6633_v21 }
 0xa71   : > { %6293 = vmatprep.subr.bf16.mxu1 %v6633_v21 }
 0xa77   : > { %6283 = vmatmul.mubr.msk.bf16.vlgmr.msra.gmra.mrb[56].mxu1 %vm756_vm4, %v6772_v39 }
 0xa78   : > { %6294 = vmatpush3.bf16.msra.mxu1 %v6837_v45  ;;  %6295 = vmatprep.mubr.msk.bf16.mxu1 %vm6634_vm3, %v6633_v21 }
 0xa79   : > { %6306 = vmatprep.subr.bf16.mxu1 %v6633_v21 }
 0xa7f   : > { %6296 = vmatmul.mubr.msk.bf16.vlgmr.msra.gmra.mrb[60].mxu1 %vm756_vm4, %v6774_v40 }
 0xa80   : > { %6307 = vmatpush3.bf16.msra.mxu1 %v6770_v38  ;;  %6308 = vmatprep.mubr.msk.bf16.mxu1 %vm6634_vm3, %v6633_v21 }
 0xa81   : > { %6332 = vmatprep.subr.bf16.mxu1 %v6633_v21 }
 0xa87   : > { %6309 = vmatmul.mubr.msk.bf16.vlgmr.msra.gmra.mrb[64].mxu1 %vm756_vm4, %v6765_v25 }
 0xa88   : > { %6333 = vmatpush3.bf16.msra.mxu1 %v6798_v42  ;;  %6334 = vmatprep.mubr.msk.bf16.mxu1 %vm6634_vm3, %v6633_v21 }
 0xa89   : > { %6345 = vmatprep.subr.bf16.mxu1 %v6633_v21 }
 0xa8f   : > { %6335 = vmatmul.mubr.msk.bf16.vlgmr.msra.gmra.mrb[68].mxu1 %vm756_vm4, %v6765_v25 }
 0xa90   : > { %6349 = vmatprep.mubr.msk.bf16.mxu1 %vm6634_vm3, %v6633_v21 }
 0xb36   : > { %v6227_v23 = vpop.f32.mrb[36].mxu1 }
 0xb37   : > { %v7257_v38 = vmax.f32 %v3011_v3, %v6227_v23  ;;  %v4077_v39 = vpop.f32.mrb[37].mxu1  ;;  %v6610_v3 = vld [vmem:[%s7367_s6] sm:$0xff]  }
 0xb38   : > { %v7262_v42 = vmax.f32 %v3010_v62, %v4077_v39  ;;  %6346 = vmatpush3.bf16.msra.mxu1 %v6610_v3 }
 0xb39   : > { %6347 = vmatprep.subr.bf16.mxu1 %v6633_v21 }
 0xb3a   : > { %v4165_v43 = vpop.f32.mrb[48].mxu1 }
 0xb3b   : > { %v6238_v45 = vpop.f32.mrb[49].mxu1 }
 0xb3c   : > { %v4168_v47 = vpop.f32.mrb[50].mxu1  ;;  %6348 = vmatpush3.bf16.msra.mxu1 %v6611_v9 }
 0xb3d   : > { %v6473_v49 = vpack.c.bf16 %v4168_v47, %v4165_v43  ;;  %v6239_v25 = vpop.f32.mrb[51].mxu1  ;;  %6353 = vmatprep.subr.bf16.mxu1 %v6633_v21 }
 0xb3f   : > { %6474 = vmatprep.subr.bf16.mxu0 %v6473_v49 }
 0xb40   : > { %6476 = vmatpush3.bf16.msra.mxu0 %v6473_v49 }
 0xb41   : > { %6478 = vmatprep.subr.bf16.mxu0 %v6973_v56 }
 0xb42   : > { %v4356_v19 = vpop.f32.mrb[52].mxu1 }
 0xb43   : > { %6245 = vmatmul.mubr.msk.f32.vlgmr.msra.gmra.mrb[104].mxu0 %vm756_vm4, %v7015_v28  ;;  %v6258_v20 = vpop.f32.mrb[53].mxu1 }
 0xb44   : > { %6480 = vmatpush3.bf16.msra.mxu0 %v6973_v56  ;;  %v4359_v26 = vpop.f32.mrb[54].mxu1  ;;  %6251 = vmatprep.mubr.msk.f32.mxu0 %vm756_vm4, %v7006_v13 }
 0xb45   : > { %v6481_v29 = vpack.c.bf16 %v4359_v26, %v4356_v19  ;;  %v6259_v31 = vpop.f32.mrb[55].mxu1 }
 0xb47   : > { %6482 = vmatprep.subr.bf16.mxu0 %v6481_v29 }
 0xb4a   : > { %v4592_v32 = vpop.f32.mrb[56].mxu1 }
 0xb4b   : > { %6252 = vmatmul.mubr.msk.f32.vlgmr.msra.gmra.mrb[104].mxu0 %vm756_vm4, %v7015_v28  ;;  %v6284_v34 = vpop.f32.mrb[57].mxu1 }
 0xb4c   : > { %6484 = vmatpush3.bf16.msra.mxu0 %v6481_v29  ;;  %v4595_v36 = vpop.f32.mrb[58].mxu1  ;;  %6264 = vmatprep.mubr.msk.f32.mxu0 %vm756_vm4, %v7095_v54 }
 0xb4d   : > { %v6489_v22 = vpack.c.bf16 %v4595_v36, %v4592_v32  ;;  %v6285_v63 = vpop.f32.mrb[59].mxu1  ;;  %6267 = vmatprep.subr.bf16.mxu0 %v6633_v21 }
 0xb52   : > { %v4710_v56 = vpop.f32.mrb[60].mxu1 }
 0xb53   : > { %6265 = vmatmul.mubr.msk.f32.vlgmr.msra.gmra.mrb[104].mxu0 %vm756_vm4, %v7106_v57  ;;  %v6297_v5 = vpop.f32.mrb[61].mxu1 }
 0xb54   : > { %6268 = vmatpush3.bf16.msra.mxu0 %v6826_v44  ;;  %v4713_v10 = vpop.f32.mrb[62].mxu1  ;;  %6269 = vmatprep.mubr.msk.bf16.mxu0 %vm6634_vm3, %v6633_v21 }
 0xb55   : > { %v6493_v37 = vpack.c.bf16 %v4713_v10, %v4710_v56  ;;  %v6298_v48 = vpop.f32.mrb[63].mxu1 }
 0xb57   : > { %6270 = vmatmul.mubr.msk.bf16.vlgmr.msra.gmra.mrb[108].mxu0 %vm756_vm4, %v6774_v40 }
 0xb58   : > { %6277 = vmatprep.mubr.msk.f32.mxu0 %vm756_vm4, %v7006_v13 }
 0xb5a   : > { %v4828_v51 = vpop.f32.mrb[64].mxu1 }
 0xb5b   : > { %v6310_v15 = vpop.f32.mrb[65].mxu1 }
 0xb5c   : > { %v4831_v46 = vpop.f32.mrb[66].mxu1 }
 0xb5d   : > { %v6497_v58 = vpack.c.bf16 %v4831_v46, %v4828_v51  ;;  %v6311_v24 = vpop.f32.mrb[67].mxu1 }
 0xb62   : > { %v5064_v30 = vpop.f32.mrb[68].mxu1 }
 0xb63   : > { %v6336_v52 = vpop.f32.mrb[69].mxu1 }
 0xb64   : > { %v5067_v44 = vpop.f32.mrb[70].mxu1 }
 0xb65   : > { %v6505_v53 = vpack.c.bf16 %v5067_v44, %v5064_v30  ;;  %v6337_v35 = vpop.f32.mrb[71].mxu1 }
 0xc2a   : > { %v4474_v50 = vpop.f32.mrb[108].mxu0 }
 0xc2b   : > { %v6271_v55 = vpop.f32.mrb[109].mxu0 }
 0xc2c   : > { %v4477_v59 = vpop.f32.mrb[110].mxu0 }
 0xc2d   : > { %v6485_v60 = vpack.c.bf16 %v4477_v59, %v4474_v50  ;;  %v6272_v61 = vpop.f32.mrb[111].mxu0 }
 0xc2f   : > { %6486 = vmatprep.subr.bf16.mxu0 %v6485_v60 }
 0xc30   : > { %6488 = vmatpush3.bf16.msra.mxu0 %v6485_v60 }
 0xc31   : > { %6490 = vmatprep.subr.bf16.mxu0 %v6489_v22 }
 0xc33   : > { %6278 = vmatmul.mubr.msk.f32.vlgmr.msra.gmra.mrb[104].mxu0 %vm756_vm4, %v7015_v28 }
 0xc34   : > { %6492 = vmatpush3.bf16.msra.mxu0 %v6489_v22  ;;  %6290 = vmatprep.mubr.msk.f32.mxu0 %vm756_vm4, %v7006_v13 }
 0xc35   : > { %6494 = vmatprep.subr.bf16.mxu0 %v6493_v37 }
 0xc3b   : > { %6291 = vmatmul.mubr.msk.f32.vlgmr.msra.gmra.mrb[104].mxu0 %vm756_vm4, %v7015_v28 }
 0xc3c   : > { %6496 = vmatpush3.bf16.msra.mxu0 %v6493_v37  ;;  %6303 = vmatprep.mubr.msk.f32.mxu0 %vm756_vm4, %v7095_v54 }
 0xc3d   : > { %6498 = vmatprep.subr.bf16.mxu0 %v6497_v58 }
 0xc43   : > { %6304 = vmatmul.mubr.msk.f32.vlgmr.msra.gmra.mrb[104].mxu0 %vm756_vm4, %v7106_v57 }
 0xc44   : > { %6500 = vmatpush3.bf16.msra.mxu0 %v6497_v58  ;;  %6316 = vmatprep.mubr.msk.f32.mxu0 %vm756_vm4, %v7198_v27 }
 0xc45   : > { %6319 = vmatprep.subr.bf16.mxu0 %v6633_v21 }
 0xc4b   : > { %6317 = vmatmul.mubr.msk.f32.vlgmr.msra.gmra.mrb[104].mxu0 %vm756_vm4, %v7205_v17 }
 0xc4c   : > { %6320 = vmatpush3.bf16.msra.mxu0 %v6787_v41  ;;  %6321 = vmatprep.mubr.msk.bf16.mxu0 %vm6634_vm3, %v6633_v21  ;;  %v5583_v41 = vld [vmem:[%s7366_s5 + $0x80] sm:$0xff] }
 0xc4f   : > { %6322 = vmatmul.mubr.msk.bf16.vlgmr.msra.gmra.mrb[112].mxu0 %vm756_vm4, %v6763_v18  ;;  %v5584_v18 = vld [vmem:[%s7366_s5 + $0x88] sm:$0xff] }
 0xc50   : > { %6329 = vmatprep.mubr.msk.f32.mxu0 %vm756_vm4, %v7198_v27 }
 0xd22   : > { %v4946_v40 = vpop.f32.mrb[112].mxu0 }
 0xd23   : > { %v6323_v13 = vpop.f32.mrb[113].mxu0 }
 0xd24   : > { %v4949_v28 = vpop.f32.mrb[114].mxu0 }
 0xd25   : > { %v6501_v54 = vpack.c.bf16 %v4949_v28, %v4946_v40  ;;  %v6324_v57 = vpop.f32.mrb[115].mxu0 }
 0xd27   : > { %6502 = vmatprep.subr.bf16.mxu0 %v6501_v54 }
 0xd28   : > { %6504 = vmatpush3.bf16.msra.mxu0 %v6501_v54 }
 0xd29   : > { %6506 = vmatprep.subr.bf16.mxu0 %v6505_v53 }
 0xd2b   : > { %6330 = vmatmul.mubr.msk.f32.vlgmr.msra.gmra.mrb[104].mxu0 %vm756_vm4, %v7205_v17  ;;  %v5588_v17 = vld [vmem:[%s7368_s7] ss:$0 sm:$0xff] }
 0xd2c   : > { %6508 = vmatpush3.bf16.msra.mxu0 %v6505_v53  ;;  %6342 = vmatprep.mubr.msk.f32.mxu0 %vm756_vm4, %v5583_v41 }
 0xd33   : > { %6343 = vmatmul.mubr.msk.f32.vlgmr.msra.gmra.mrb[104].mxu0 %vm756_vm4, %v5584_v18 }
 0xe06   : > { %v6344_v62 = vpop.f32.mrb[104].mxu0 }
 0xe07   : > { %v5158_v1 = vmax.f32 %v7257_v38, %v6344_v62  ;;  %v5146_v4 = vpop.f32.mrb[105].mxu0 }
 0xe08   : > { %v5157_v6 = vmax.f32 %v7262_v42, %v5146_v4 }
 0xe09   : > { %v5167_v7 = vadd.f32 %v5587_v0, %v5158_v1 }
 0xe0a   : > { %v5166_v2 = vadd.f32 %v5587_v0, %v5157_v6 }
 0xe0b   : > { %v5169_v16 = vmax.f32 %v5167_v7, 0.0 }
 0xe0c   : > { %v5168_v27 = vmax.f32 %v5166_v2, 0.0 }
 0xe0e   : > { %v5170_v8 = vpack.c.bf16 %v5169_v16, %v5168_v27 }
 0xe10   : > { %6350 = vmatmul.mubr.msk.bf16.vlgmr.msra.gmra.mrb[72].mxu1 %vm5194_vm5, %v5170_v8 }
 0xe11   : > { %6354 = vmatpush3.bf16.msra.mxu1 %v6612_v33  ;;  %6361 = vmatprep.mubr.msk.bf16.mxu1 %vm6634_vm3, %v6633_v21 }
 0xe12   : > { %6355 = vmatprep.subr.bf16.mxu1 %v6633_v21 }
 0xe15   : > { %6356 = vmatpush3.bf16.msra.mxu1 %v6613_v11 }
 0xe16   : > { %6357 = vmatprep.subr.bf16.mxu1 %v6633_v21 }
 0xe19   : > { %6358 = vmatpush3.bf16.msra.mxu1 %v6614_v12 }
 0xe1a   : > { %6359 = vmatprep.subr.bf16.mxu1 %v6633_v21  ;;  %v5592_v21 = vld [vmem:[%s7370_s9] ss:$0 sm:$0xff] }
 0xe1d   : > { %6360 = vmatpush3.bf16.msra.mxu1 %v6615_v14 }
 0xee3   : > { %v5232_v23 = vpop.f32.mrb[72].mxu1 }
 0xee4   : > { %v5233_v38 = vadd.f32 %v5588_v17, %v5232_v23  ;;  %v6351_v39 = vpop.f32.mrb[73].mxu1 }
 0xee5   : > { %v5235_v42 = vpop.f32.mrb[74].mxu1 }
 0xee6   : > { %v5236_v43 = vadd.f32 %v5588_v17, %v5235_v42  ;;  %v6352_v45 = vpop.f32.mrb[75].mxu1  ;;  %v5239_v47 = vmax.f32 %v5233_v38, 0.0 }
 0xee8   : > { %v5240_v49 = vmax.f32 %v5236_v43, 0.0 }
 0xeea   : > { %v5241_v25 = vpack.c.bf16 %v5240_v49, %v5239_v47 }
 0xeec   : > { %6362 = vmatmul.mubr.msk.bf16.vlgmr.msra.gmra.mrb[76].mxu1 %vm5281_vm6, %v5241_v25 }
 0xfbf   : > { %v5319_v19 = vpop.f32.mrb[76].mxu1 }
 0xfc0   : > { %v5320_v20 = vadd.f32 %v5592_v21, %v5319_v19  ;;  %v6363_v26 = vpop.f32.mrb[77].mxu1 }
 0xfc1   : > { %v5322_v29 = vpop.f32.mrb[78].mxu1 }
 0xfc2   : > { %v5326_v31 = vsub.f32 0.0, %v5320_v20  ;;  %v5323_v32 = vadd.f32 %v5592_v21, %v5322_v29  ;;  %v6364_v34 = vpop.f32.mrb[79].mxu1 }
 0xfc4   : > { %v5328_v36 = vmul.f32 1.442695, %v5326_v31  ;;  %v5327_v22 = vsub.f32 0.0, %v5323_v32 }
 0xfc6   : > { %6616 = vpow2.f32 %v5328_v36  ;;  %v5330_v63 = vmul.f32 1.442695, %v5327_v22 }
 0xfc8   : > { %6618 = vpow2.f32 %v5330_v63 }
 0xfd0   : > { %v6617_v56 = vpop.eup %6616 }
 0xfd1   : > { %v5332_v5 = vadd.f32 1.0, %v6617_v56 }
 0xfd2   : > { %v6619_v10 = vpop.eup %6618 }
 0xfd3   : > { %6620 = vrcp.f32 %v5332_v5  ;;  %v5333_v37 = vadd.f32 1.0, %v6619_v10 }
 0xfd5   : > { %6622 = vrcp.f32 %v5333_v37 }
 0xfdd   : > { %v6621_v48 = vpop.eup %6620 }
 0xfde   : > { %5338 = vst.msk [vmem:[%s359_s26] sm:$0xff] %vm756_vm4, %v6621_v48 }
 0xfdf   : > { %v6623_v51 = vpop.eup %6622 }
 0xfe0   : > { %5339 = vst.msk [vmem:[%s359_s26 + $0x8] sm:$0xff] %vm756_vm4, %v6623_v51 }
 0xfe1 PF: > { %s20_s13 = sadd.s32 1, %s6630_s13  }
 0xfe2   : > { %p17_p4 = scmp.ge.s32.totalorder %s20_s13, 4  }
 0xfe4   :  { %19 = sbr.rel (!%p17_p4) target bundleno = 1 (0x1), region = 106 }

</bundles_post_ra>
